<compile_context>
chip_gen: v7x
topology: tpu7x:2x2x1
jax: 0.10.0
libtpu: 0.0.40
codegen_flags: <defaults>
</compile_context>

<pallas_src>
import functools
import math

import jax
import jax.numpy as jnp
from jax.experimental import pallas as pl
from jax.experimental.pallas import tpu as pltpu

PADW = 128  # padded hidden width == padded (mu|sigma) head width per metadata block


# ----------------------------- helpers ---------------------------------------


def _round_up(x, m):
    return ((x + m - 1) // m) * m


def _softplus(x):
    # numerically stable softplus
    return jnp.maximum(x, 0.0) + jnp.log(1.0 + jnp.exp(-jnp.abs(x)))


def _full_spec(a):
    nd = a.ndim
    return pl.BlockSpec(a.shape, lambda i, _nd=nd: (0,) * _nd)


def _pick_tile(bo):
    t = min(512, _round_up(bo, 16))
    # keep >= 2 grid steps (v7x: "parallel" axis shards across 2 TCs) once halving
    # still leaves >= 128 candidate rows per tile; on v5e/v6e this just maximizes T.
    half = _round_up((bo + 1) // 2, 16)
    if half >= 128:
        t = min(t, half)
    return t


# ----------------------------- kernels ---------------------------------------


def _encoder_kernel(nc_ref, center_ref, meta_ref, ctx_ref, w_ref, b_ref,
                    enc_out_ref, rel_ref, *, latent):
    """q(z | SF, metadata, context): attention gating + fused MLP -> (mu | sigma)."""
    f32 = jnp.float32
    bf16 = jnp.bfloat16
    L = latent

    center = center_ref[...]                       # (B, E) f32
    meta = meta_ref[...]                           # (B, E)
    ctx = ctx_ref[...]                             # (B, C, E)
    B, C, E = ctx.shape
    padw = enc_out_ref.shape[1]

    # --- metadata-gated attention over context words (mask built in-kernel) ---
    scores = jnp.sum(meta[:, None, :] * ctx, axis=-1) * f32(1.0 / math.sqrt(E))  # (B, C)
    pos = jax.lax.broadcasted_iota(jnp.int32, (B, C), 1)
    padded = pos >= nc_ref[...]                    # (B, C); nc is (B, 1) int32
    scores = jnp.where(padded, f32(-1e30), scores)
    scores = scores - jnp.max(scores, axis=-1, keepdims=True)
    expw = jnp.where(padded, f32(0.0), jnp.exp(scores))
    denom = jnp.maximum(jnp.sum(expw, axis=-1, keepdims=True), f32(1e-30))  # no 0/0 NaN
    rel = expw / denom                             # (B, C)

    relw = rel_ref.shape[1]
    if relw > C:
        rel_ref[...] = jnp.concatenate([rel, jnp.zeros((B, relw - C), f32)], axis=-1)
    else:
        rel_ref[...] = rel

    summary = jnp.sum(rel[:, :, None] * ctx, axis=1)                  # (B, E)

    # --- fused MLP: [center | summary | meta] @ (3E, PADW) -> head (mu | sigma) ---
    x = jnp.concatenate([center, summary, meta], axis=-1).astype(bf16)  # (B, 3E)
    wf = w_ref[0:3 * E, :]                         # (3E, PADW) bf16 (pre-packed on host)
    wuv = w_ref[3 * E:3 * E + padw, :]             # (PADW, PADW) bf16
    b_hid = b_ref[0:1, :]                          # (1, PADW) f32
    b_head = b_ref[1:2, :]                         # (1, PADW) f32

    h = jnp.maximum(jnp.dot(x, wf, preferred_element_type=f32) + b_hid, 0.0)
    head = jnp.dot(h.astype(bf16), wuv, preferred_element_type=f32) + b_head

    lane = jax.lax.broadcasted_iota(jnp.int32, head.shape, 1)
    sig = _softplus(head) + f32(1e-4)
    # columns [0, L) = sf_mu, column L = sf_sigma, rest = don't-care
    enc_out_ref[...] = jnp.where(lane == L, sig, head)


def _rank_kernel(sf_ref, x_ref, p_ref, w_ref, b_ref, score_ref, *, latent, num_meta):
    """Per candidate tile: decoder p(z|LF, metadata_m) for ALL m, KL vs q, weighted sum."""
    f32 = jnp.float32
    bf16 = jnp.bfloat16
    L = latent
    M = num_meta
    T, kin = x_ref.shape
    mw = w_ref.shape[1]                            # == M * PADW
    padw = mw // M

    x = x_ref[...]                                 # (T, KIN) bf16: [lf_avg | dm_0..dm_{M-1}]
    w_hid = w_ref[0:kin, :]                        # (KIN, M*PADW) bf16, block-structured
    w_head = w_ref[kin:kin + mw, :]                # (M*PADW, M*PADW) bf16, block-diagonal
    b_hid = b_ref[0:1, :]                          # (1, M*PADW) f32
    b_head = b_ref[1:2, :]                         # (1, M*PADW) f32

    # ONE hidden matmul for all metadata blocks, ONE block-diagonal head matmul.
    h = jnp.maximum(jnp.dot(x, w_hid, preferred_element_type=f32) + b_hid, 0.0)  # (T, M*PADW)
    head = jnp.dot(h.astype(bf16), w_head, preferred_element_type=f32) + b_head  # (T, M*PADW)

    sf = sf_ref[...]                               # (T, LW) f32 encoder params per candidate
    sf_mu = sf[:, :L]                              # (T, L)
    sf_sig = sf[:, L:L + 1]                        # (T, 1)
    log_sf_sig = jnp.log(sf_sig)
    sf_sig_sq = sf_sig * sf_sig

    p = p_ref[...]                                 # (T, M) f32
    wkl = jnp.zeros((T, 1), f32)
    for m in range(M):                             # static; elementwise/XLU only (no matmuls)
        blk = head[:, m * padw:(m + 1) * padw]
        lf_mu = blk[:, :L]                         # (T, L)
        lf_sig = _softplus(blk[:, L:L + 1]) + f32(1e-4)   # (T, 1)
        diff = sf_mu - lf_mu
        sq = jnp.sum(diff * diff, axis=-1, keepdims=True)  # (T, 1)
        kl = (L * (jnp.log(lf_sig) - log_sf_sig)
              + (L * sf_sig_sq + sq) / (2.0 * lf_sig * lf_sig)
              - 0.5 * L)                           # (T, 1)
        wkl = wkl + p[:, m:m + 1] * kl
    # lane-dense, unmasked store (broadcast across 128 lanes).
    # TODO(synk): lane-pack scores into (n_tiles, 8, 128) once BO is large enough for
    # writeback to show on the HBM roofline.
    score_ref[...] = jnp.broadcast_to(-wkl, score_ref.shape)


# ----------------------------- weight packing ---------------------------------


def _pack_encoder_weights(params, E, H, L):
    f32 = jnp.float32
    w = jnp.zeros((3 * E + PADW, PADW), f32)
    w = w.at[0:E, :H].set(params["enc_Wf1"].astype(f32))
    w = w.at[E:2 * E, :H].set(params["enc_Wf2"].astype(f32))
    w = w.at[2 * E:3 * E, :H].set(params["enc_Wf3"].astype(f32))
    o = 3 * E
    w = w.at[o:o + H, :L].set(params["enc_Wu"].astype(f32))
    w = w.at[o:o + H, L].set(params["enc_Wv"].reshape(-1).astype(f32))
    return w.astype(jnp.bfloat16)


def _pack_encoder_biases(params, H, L):
    f32 = jnp.float32
    b = jnp.zeros((8, PADW), f32)
    b = b.at[0, :H].set(params["enc_bf"].reshape(-1).astype(f32))
    b = b.at[1, :L].set(params["enc_bu"].reshape(-1).astype(f32))
    b = b.at[1, L].set(params["enc_bv"].reshape(()).astype(f32))
    return b


def _pack_decoder_weights(params, E, H, L, M):
    """Block-structured hidden weight (input rows = [lf_avg | dm_0..dm_{M-1}]) stacked on
    top of a block-diagonal head weight; both bf16, one resident slab."""
    f32 = jnp.float32
    kin = (1 + M) * E
    mw = M * PADW
    w = jnp.zeros((kin + mw, mw), f32)
    wf1 = params["dec_Wf1"].astype(f32)            # (E, H)  lf_avg -> hidden
    wf2 = params["dec_Wf2"].astype(f32)            # (E, H)  metadata emb -> hidden
    wu = params["dec_Wu"].astype(f32)              # (H, L)
    wv = params["dec_Wv"].reshape(-1).astype(f32)  # (H,)
    for m in range(M):
        c0 = m * PADW
        w = w.at[0:E, c0:c0 + H].set(wf1)                       # lf part, every block
        w = w.at[(1 + m) * E:(2 + m) * E, c0:c0 + H].set(wf2)   # dm_m part, block m only
        r0 = kin + m * PADW                                     # head, block-diagonal
        w = w.at[r0:r0 + H, c0:c0 + L].set(wu)
        w = w.at[r0:r0 + H, c0 + L].set(wv)
    return w.astype(jnp.bfloat16)


def _pack_decoder_biases(params, H, L, M):
    f32 = jnp.float32
    mw = M * PADW
    b = jnp.zeros((8, mw), f32)
    for m in range(M):
        c0 = m * PADW
        b = b.at[0, c0:c0 + H].set(params["dec_bf"].reshape(-1).astype(f32))
        b = b.at[1, c0:c0 + L].set(params["dec_bu"].reshape(-1).astype(f32))
        b = b.at[1, c0 + L].set(params["dec_bv"].reshape(()).astype(f32))
    return b


# ----------------------------- wrapper ---------------------------------------


def lmc_acronym_expander_forward(
    params,
    sf_ids, section_ids, category_ids, context_ids,
    lf_ids, target_lf_ids, lf_token_ct, lf_metadata_ids, lf_metadata_p,
    num_outputs, num_contexts,
):
    f32 = jnp.float32
    bf16 = jnp.bfloat16
    B, O, G = lf_ids.shape
    C = context_ids.shape[1]
    M = lf_metadata_ids.shape[-1]
    E = params["enc_tok"].shape[1]
    H = params["enc_Wf1"].shape[1]
    L = params["enc_Wu"].shape[1]
    BO = B * O

    assert E % 8 == 0 and H <= PADW and (L + 1) <= PADW

    # -------- encoder q(z | SF, section, context): runs once, tiny --------
    center_emb = params["enc_tok"][sf_ids].astype(f32)          # (B, E)
    sec_emb = params["enc_meta"][section_ids].astype(f32)       # (B, E)
    ctx_emb = params["enc_tok"][context_ids].astype(f32)        # (B, C, E)
    nc = num_contexts.astype(jnp.int32).reshape(B, 1)
    enc_w = _pack_encoder_weights(params, E, H, L)              # bf16, host-packed
    enc_b = _pack_encoder_biases(params, H, L)                  # f32 biases

    relw = _round_up(C, 128)
    enc_inputs = [nc, center_emb, sec_emb, ctx_emb, enc_w, enc_b]
    enc_out, rel_pad = pl.pallas_call(
        functools.partial(_encoder_kernel, latent=L),
        grid=(1,),
        in_specs=[_full_spec(a) for a in enc_inputs],
        out_specs=(
            pl.BlockSpec((B, PADW), lambda i: (0, 0)),
            pl.BlockSpec((B, relw), lambda i: (0, 0)),
        ),
        out_shape=(
            jax.ShapeDtypeStruct((B, PADW), f32),   # [sf_mu | sf_sigma | pad]
            jax.ShapeDtypeStruct((B, relw), f32),   # rel_weights (lane padded)
        ),
        compiler_params=pltpu.CompilerParams(dimension_semantics=("arbitrary",)),
    )(*enc_inputs)
    rel_weights = rel_pad[:, :C]

    # -------- decoder-side inputs (embedding gathers stay in JAX glue) --------
    lf_sum = params["dec_tok"][lf_ids].astype(f32).sum(axis=2).reshape(BO, E)
    lf_norm = jnp.maximum(lf_token_ct.astype(f32), 1.0).reshape(BO, 1)   # clamp_min(1)
    lf_avg = lf_sum / lf_norm                                            # (BO, E)
    dmeta = params["dec_meta"][lf_metadata_ids].astype(f32).reshape(BO, M * E)
    # lane-dense packed MXU input: [lf_avg | dm_0 | ... | dm_{M-1}], bf16 (one DMA/tile)
    x_pack = jnp.concatenate([lf_avg, dmeta], axis=-1).astype(bf16)      # (BO, (1+M)E)
    p_flat = lf_metadata_p.reshape(BO, M).astype(f32)

    kin = (1 + M) * E
    T = _pick_tile(BO)
    BO_pad = _round_up(BO, T)
    pad = BO_pad - BO
    if pad:
        x_pack = jnp.pad(x_pack, ((0, pad), (0, 0)))
        p_flat = jnp.pad(p_flat, ((0, pad), (0, 0)))

    # broadcast encoder params to candidates (the module's `repeat`) via a cheap gather,
    # slimmed to the L+1 lanes actually read by the rank kernel (padded to 8)
    LW = _round_up(L + 1, 8)
    b_idx = jnp.clip(jnp.arange(BO_pad) // O, 0, B - 1)
    sf_flat = enc_out[:, :LW][b_idx]                                     # (BO_pad, LW)

    dec_w = _pack_decoder_weights(params, E, H, L, M)                    # bf16 weight slab
    dec_b = _pack_decoder_biases(params, H, L, M)                        # f32 bias slab
    n_tiles = BO_pad // T

    score_slab = pl.pallas_call(
        functools.partial(_rank_kernel, latent=L, num_meta=M),
        grid=(n_tiles,),
        in_specs=[
            pl.BlockSpec((T, LW), lambda i: (i, 0)),              # sf params per candidate
            pl.BlockSpec((T, kin), lambda i: (i, 0)),             # packed [lf | metadata] emb
            pl.BlockSpec((T, M), lambda i: (i, 0)),               # p(metadata | LF)
            pl.BlockSpec(dec_w.shape, lambda i: (0, 0)),          # bf16 weights (resident)
            pl.BlockSpec(dec_b.shape, lambda i: (0, 0)),          # f32 biases (resident)
        ],
        out_specs=pl.BlockSpec((T, PADW), lambda i: (i, 0)),
        out_shape=jax.ShapeDtypeStruct((BO_pad, PADW), f32),
        compiler_params=pltpu.CompilerParams(dimension_semantics=("parallel",)),
    )(sf_flat, x_pack, p_flat, dec_w, dec_b)

    score = score_slab[:BO, 0].reshape(B, O)
    out_mask = jnp.arange(O)[None, :] >= num_outputs[:, None]
    score = jnp.where(out_mask, -jnp.inf, score)
    # category_ids is unused by the original forward; target_lf_ids is passed through.
    return score, target_lf_ids, rel_weights


# ----------------------------- pure-JAX reference ------------------------------


def _reference_forward(params, sf_ids, section_ids, category_ids, context_ids,
                       lf_ids, target_lf_ids, lf_token_ct, lf_metadata_ids,
                       lf_metadata_p, num_outputs, num_contexts):
    f32, bf16 = jnp.float32, jnp.bfloat16
    B, O, G = lf_ids.shape
    C = context_ids.shape[1]
    E = params["enc_tok"].shape[1]
    L = params["enc_Wu"].shape[1]

    center = params["enc_tok"][sf_ids].astype(f32)
    meta = params["enc_meta"][section_ids].astype(f32)
    ctx = params["enc_tok"][context_ids].astype(f32)
    scores = (meta[:, None, :] * ctx).sum(-1) / math.sqrt(E)
    padded = jnp.arange(C)[None, :] >= num_contexts[:, None]
    scores = jnp.where(padded, -1e30, scores)
    scores = scores - scores.max(-1, keepdims=True)
    expw = jnp.where(padded, 0.0, jnp.exp(scores))
    rel = expw / jnp.maximum(expw.sum(-1, keepdims=True), 1e-30)
    summary = (rel[:, :, None] * ctx).sum(1)

    x = jnp.concatenate([center, summary, meta], -1)
    wf = jnp.concatenate([params["enc_Wf1"], params["enc_Wf2"], params["enc_Wf3"]], 0)
    h = jax.nn.relu(jnp.dot(x.astype(bf16), wf.astype(bf16),
                            preferred_element_type=f32) + params["enc_bf"])
    sf_mu = jnp.dot(h.astype(bf16), params["enc_Wu"].astype(bf16),
                    preferred_element_type=f32) + params["enc_bu"]          # (B, L)
    sf_sig = jax.nn.softplus(
        jnp.dot(h.astype(bf16), params["enc_Wv"].astype(bf16),
                preferred_element_type=f32) + params["enc_bv"]) + 1e-4      # (B, 1)

    lf_avg = (params["dec_tok"][lf_ids].astype(f32).sum(2)
              / jnp.maximum(lf_token_ct.astype(f32), 1.0)[..., None])       # (B,O,E)
    dm = params["dec_meta"][lf_metadata_ids].astype(f32)                    # (B,O,M,E)
    pre = (jnp.einsum("boe,eh->boh", lf_avg.astype(bf16), params["dec_Wf1"].astype(bf16),
                      preferred_element_type=f32)[:, :, None, :]
           + jnp.einsum("bome,eh->bomh", dm.astype(bf16), params["dec_Wf2"].astype(bf16),
                        preferred_element_type=f32)
           + params["dec_bf"])
    hd = jax.nn.relu(pre)                                                   # (B,O,M,H)
    lf_mu = jnp.einsum("bomh,hl->boml", hd.astype(bf16), params["dec_Wu"].astype(bf16),
                       preferred_element_type=f32) + params["dec_bu"]
    lf_sig = jax.nn.softplus(
        jnp.einsum("bomh,hl->boml", hd.astype(bf16), params["dec_Wv"].astype(bf16),
                   preferred_element_type=f32) + params["dec_bv"]) + 1e-4   # (B,O,M,1)

    diff = sf_mu[:, None, None, :] - lf_mu
    sq = (diff * diff).sum(-1, keepdims=True)
    ssig = sf_sig[:, None, None, :]
    kl = (L * (jnp.log(lf_sig) - jnp.log(ssig))
          + (L * ssig * ssig + sq) / (2.0 * lf_sig * lf_sig) - 0.5 * L)     # (B,O,M,1)
    score = -(kl[..., 0] * lf_metadata_p.astype(f32)).sum(-1)               # (B,O)
    out_mask = jnp.arange(O)[None, :] >= num_outputs[:, None]
    score = jnp.where(out_mask, -jnp.inf, score)
    return score, rel


# ----------------------------- param init ------------------------------------


def init_params(key, vocab=100, meta_vocab=20, embed=32, hidden=64, latent=32):
    ks = jax.random.split(key, 20)
    f32 = jnp.float32
    s = 0.1

    def table(k, rows, cols):
        t = jax.random.normal(k, (rows, cols), f32)
        return t.at[0].set(0.0)  # padding_idx = 0

    return {
        "enc_tok": table(ks[0], vocab, embed),
        "dec_tok": table(ks[1], vocab, embed),
        "enc_meta": table(ks[2], meta_vocab, embed),
        "dec_meta": table(ks[3], meta_vocab, embed),
        "enc_Wf1": s * jax.random.normal(ks[4], (embed, hidden), f32),
        "enc_Wf2": s * jax.random.normal(ks[5], (embed, hidden), f32),
        "enc_Wf3": s * jax.random.normal(ks[6], (embed, hidden), f32),
        "enc_bf": jnp.zeros((1, hidden), f32),
        "enc_Wu": s * jax.random.normal(ks[7], (hidden, latent), f32),
        "enc_bu": jnp.zeros((1, latent), f32),
        "enc_Wv": s * jax.random.normal(ks[8], (hidden, 1), f32),
        "enc_bv": jnp.zeros((1, 1), f32),
        "dec_Wf1": s * jax.random.normal(ks[9], (embed, hidden), f32),
        "dec_Wf2": s * jax.random.normal(ks[10], (embed, hidden), f32),
        "dec_bf": jnp.zeros((1, hidden), f32),
        "dec_Wu": s * jax.random.normal(ks[11], (hidden, latent), f32),
        "dec_bu": jnp.zeros((1, latent), f32),
        "dec_Wv": s * jax.random.normal(ks[12], (hidden, 1), f32),
        "dec_bv": jnp.zeros((1, 1), f32),
    }


# ----------------------------- main -------------------------------------------

if __name__ == "__main__":
    # batch, max_output, max_lf_ngram, num_metadata, 2*ctx_window
    B, O, G, M, C = 2, 4, 5, 3, 8
    V, MV = 100, 20

    key = jax.random.PRNGKey(0)
    kp, k1, k2, k3, k4, k5, k6, k7 = jax.random.split(key, 8)

    params = init_params(kp, vocab=V, meta_vocab=MV, embed=32, hidden=64, latent=32)

    sf_ids = jax.random.randint(k1, (B,), 1, V)
    section_ids = jax.random.randint(k2, (B,), 1, MV)
    category_ids = jax.random.randint(k2, (B,), 1, MV)      # unused by forward
    context_ids = jax.random.randint(k3, (B, C), 1, V)
    num_contexts = jnp.array([C, 5], dtype=jnp.int32)

    lf_ids = jax.random.randint(k4, (B, O, G), 1, V)
    lf_token_ct = jax.random.randint(k5, (B, O), 1, G + 1)
    target_lf_ids = jnp.array([0, 1], dtype=jnp.int32)
    num_outputs = jnp.array([O, 2], dtype=jnp.int32)

    lf_metadata_ids = jax.random.randint(k6, (B, O, M), 1, MV)
    p_raw = jax.random.uniform(k7, (B, O, M), minval=0.1, maxval=1.0)
    lf_metadata_p = p_raw / p_raw.sum(-1, keepdims=True)

    fwd = jax.jit(lmc_acronym_expander_forward)
    score, tgt, rel_weights = fwd(
        params, sf_ids, section_ids, category_ids, context_ids,
        lf_ids, target_lf_ids, lf_token_ct, lf_metadata_ids, lf_metadata_p,
        num_outputs, num_contexts,
    )
    jax.block_until_ready((score, tgt, rel_weights))

    assert score.shape == (B, O) and rel_weights.shape == (B, C)
    valid = jnp.arange(O)[None, :] < num_outputs[:, None]
    assert bool(jnp.all(jnp.where(valid, jnp.isfinite(score), True)))
    assert bool(jnp.all(jnp.isfinite(rel_weights)))

    # pure-JAX reference with identical synthetic weights & bf16 MXU casts:
    # differences come only from accumulation order -> tight-ish tolerance check.
    ref_score, ref_rel = _reference_forward(
        params, sf_ids, section_ids, category_ids, context_ids,
        lf_ids, target_lf_ids, lf_token_ct, lf_metadata_ids, lf_metadata_p,
        num_outputs, num_contexts,
    )
    err = jnp.where(valid, jnp.abs(score - ref_score), 0.0)
    tol = 2e-2 + 2e-2 * jnp.where(valid, jnp.abs(ref_score), 0.0)
    assert bool(jnp.all(err <= tol))
    assert bool(jnp.max(jnp.abs(rel_weights - ref_rel)) < 1e-3)

    print("KERNEL_OK")
</pallas_src>

<mosaic_0001>
module attributes {stable_mosaic.version = 11 : i64} {
  func.func @_encoder_kernel(%arg0: i32, %arg1: memref<2x1xi32, #tpu.memory_space<vmem>>, %arg2: memref<2x32xf32, #tpu.memory_space<vmem>>, %arg3: memref<2x32xf32, #tpu.memory_space<vmem>>, %arg4: memref<2x8x32xf32, #tpu.memory_space<vmem>>, %arg5: memref<224x128xbf16, #tpu.memory_space<vmem>>, %arg6: memref<8x128xf32, #tpu.memory_space<vmem>>, %arg7: memref<2x128xf32, #tpu.memory_space<vmem>>, %arg8: memref<2x128xf32, #tpu.memory_space<vmem>>) attributes {dimension_semantics = [#tpu.dimension_semantics<arbitrary>], iteration_bounds = array<i64: 1>, scalar_prefetch = 0 : i64, scratch_operands = 0 : i64, tpu.core_type = #tpu.core_type<tc>, window_params = [{pipeline_mode = #tpu.pipeline_mode<synchronous>, transform_indices = @transform_0, window_bounds = array<i64: 2, 1>}, {pipeline_mode = #tpu.pipeline_mode<synchronous>, transform_indices = @transform_1, window_bounds = array<i64: 2, 32>}, {pipeline_mode = #tpu.pipeline_mode<synchronous>, transform_indices = @transform_2, window_bounds = array<i64: 2, 32>}, {pipeline_mode = #tpu.pipeline_mode<synchronous>, transform_indices = @transform_3, window_bounds = array<i64: 2, 8, 32>}, {pipeline_mode = #tpu.pipeline_mode<synchronous>, transform_indices = @transform_4, window_bounds = array<i64: 224, 128>}, {pipeline_mode = #tpu.pipeline_mode<synchronous>, transform_indices = @transform_5, window_bounds = array<i64: 8, 128>}, {pipeline_mode = #tpu.pipeline_mode<synchronous>, transform_indices = @transform_6, window_bounds = array<i64: 2, 128>}, {pipeline_mode = #tpu.pipeline_mode<synchronous>, transform_indices = @transform_7, window_bounds = array<i64: 2, 128>}]} {
    %c0 = arith.constant 0 : index
    %c0_0 = arith.constant 0 : index
    %0 = vector.load %arg2[%c0, %c0_0] : memref<2x32xf32, #tpu.memory_space<vmem>>, vector<2x32xf32>
    %c0_1 = arith.constant 0 : index
    %c0_2 = arith.constant 0 : index
    %1 = vector.load %arg3[%c0_1, %c0_2] : memref<2x32xf32, #tpu.memory_space<vmem>>, vector<2x32xf32>
    %c0_3 = arith.constant 0 : index
    %c0_4 = arith.constant 0 : index
    %c0_5 = arith.constant 0 : index
    %2 = vector.load %arg4[%c0_3, %c0_4, %c0_5] : memref<2x8x32xf32, #tpu.memory_space<vmem>>, vector<2x8x32xf32>
    %3 = vector.shape_cast %1 : vector<2x32xf32> to vector<2x1x32xf32>
    %4 = vector.broadcast %3 : vector<2x1x32xf32> to vector<2x8x32xf32>
    %5 = arith.mulf %4, %2 : vector<2x8x32xf32>
    %cst = arith.constant dense<0.000000e+00> : vector<2x8xf32>
    %6 = vector.multi_reduction <add>, %5, %cst [2] : vector<2x8x32xf32> to vector<2x8xf32>
    %cst_6 = arith.constant 0.176776692 : f32
    %7 = vector.broadcast %cst_6 : f32 to vector<2x8xf32>
    %8 = arith.mulf %6, %7 : vector<2x8xf32>
    %9 = tpu.iota {dimensions = array<i32: 1>} : vector<2x8xi32>
    %c0_7 = arith.constant 0 : index
    %c0_8 = arith.constant 0 : index
    %10 = vector.load %arg1[%c0_7, %c0_8] : memref<2x1xi32, #tpu.memory_space<vmem>>, vector<2x1xi32>
    %11 = vector.broadcast %10 : vector<2x1xi32> to vector<2x8xi32>
    %12 = arith.cmpi sge, %9, %11 : vector<2x8xi32>
    %cst_9 = arith.constant -1.000000e+30 : f32
    %13 = vector.broadcast %cst_9 : f32 to vector<2x8xf32>
    %14 = arith.select %12, %13, %8 : vector<2x8xi1>, vector<2x8xf32>
    %cst_10 = arith.constant dense<0xFF800000> : vector<2xf32>
    %15 = vector.multi_reduction <maximumf>, %14, %cst_10 [1] : vector<2x8xf32> to vector<2xf32>
    %16 = vector.shape_cast %15 : vector<2xf32> to vector<2x1xf32>
    %17 = vector.broadcast %16 : vector<2x1xf32> to vector<2x8xf32>
    %18 = arith.subf %14, %17 : vector<2x8xf32>
    %19 = math.exp %18 : vector<2x8xf32>
    %cst_11 = arith.constant 0.000000e+00 : f32
    %20 = vector.broadcast %cst_11 : f32 to vector<2x8xf32>
    %21 = arith.select %12, %20, %19 : vector<2x8xi1>, vector<2x8xf32>
    %cst_12 = arith.constant dense<0.000000e+00> : vector<2xf32>
    %22 = vector.multi_reduction <add>, %21, %cst_12 [1] : vector<2x8xf32> to vector<2xf32>
    %23 = vector.shape_cast %22 : vector<2xf32> to vector<2x1xf32>
    %cst_13 = arith.constant 1.000000e-30 : f32
    %24 = vector.broadcast %cst_13 : f32 to vector<2x1xf32>
    %25 = arith.maximumf %23, %24 : vector<2x1xf32>
    %26 = vector.broadcast %25 : vector<2x1xf32> to vector<2x8xf32>
    %27 = arith.divf %21, %26 : vector<2x8xf32>
    %cst_14 = arith.constant 0.000000e+00 : f32
    %28 = vector.broadcast %cst_14 : f32 to vector<2x120xf32>
    %29 = tpu.concatenate %27, %28 in 1 : vector<2x8xf32>, vector<2x120xf32> -> vector<2x128xf32>
    %c0_15 = arith.constant 0 : index
    %c0_16 = arith.constant 0 : index
    %30 = vector.load %arg8[%c0_15, %c0_16] : memref<2x128xf32, #tpu.memory_space<vmem>>, vector<2x128xf32>
    tpu.vector_store %arg8[%c0_15, %c0_16], %29 {strides = array<i32>} : memref<2x128xf32, #tpu.memory_space<vmem>>, vector<2x128xf32>,
    %31 = vector.shape_cast %27 : vector<2x8xf32> to vector<2x8x1xf32>
    %32 = vector.broadcast %31 : vector<2x8x1xf32> to vector<2x8x32xf32>
    %33 = arith.mulf %32, %2 : vector<2x8x32xf32>
    %cst_17 = arith.constant dense<0.000000e+00> : vector<2x32xf32>
    %34 = vector.multi_reduction <add>, %33, %cst_17 [1] : vector<2x8x32xf32> to vector<2x32xf32>
    %35 = tpu.concatenate %0, %34, %1 in 1 : vector<2x32xf32>, vector<2x32xf32>, vector<2x32xf32> -> vector<2x96xf32>
    %36 = arith.truncf %35 : vector<2x96xf32> to vector<2x96xbf16>
    %c0_18 = arith.constant 0 : index
    %c0_19 = arith.constant 0 : index
    %37 = vector.load %arg5[%c0_18, %c0_19] : memref<224x128xbf16, #tpu.memory_space<vmem>>, vector<96x128xbf16>
    %c96 = arith.constant 96 : index
    %c0_20 = arith.constant 0 : index
    %38 = vector.load %arg5[%c96, %c0_20] : memref<224x128xbf16, #tpu.memory_space<vmem>>, vector<128x128xbf16>
    %c0_21 = arith.constant 0 : index
    %c0_22 = arith.constant 0 : index
    %39 = vector.load %arg6[%c0_21, %c0_22] : memref<8x128xf32, #tpu.memory_space<vmem>>, vector<1x128xf32>
    %c1 = arith.constant 1 : index
    %c0_23 = arith.constant 0 : index
    %40 = vector.load %arg6[%c1, %c0_23] : memref<8x128xf32, #tpu.memory_space<vmem>>, vector<1x128xf32>
    %cst_24 = arith.constant dense<0.000000e+00> : vector<2x128xf32>
    %41 = tpu.matmul %36, %37, %cst_24 {dimension_numbers = #tpu.dot_dimension_numbers<[1], [0], [0], [1], [0, 0, 1, 1], [], []>} : vector<2x96xbf16>, vector<96x128xbf16>, vector<2x128xf32> -> vector<2x128xf32>
    %42 = vector.broadcast %39 : vector<1x128xf32> to vector<2x128xf32>
    %43 = arith.addf %41, %42 : vector<2x128xf32>
    %cst_25 = arith.constant 0.000000e+00 : f32
    %44 = vector.broadcast %cst_25 : f32 to vector<2x128xf32>
    %45 = arith.maximumf %43, %44 : vector<2x128xf32>
    %46 = arith.truncf %45 : vector<2x128xf32> to vector<2x128xbf16>
    %cst_26 = arith.constant dense<0.000000e+00> : vector<2x128xf32>
    %47 = tpu.matmul %46, %38, %cst_26 {dimension_numbers = #tpu.dot_dimension_numbers<[1], [0], [0], [1], [0, 0, 1, 1], [], []>} : vector<2x128xbf16>, vector<128x128xbf16>, vector<2x128xf32> -> vector<2x128xf32>
    %48 = vector.broadcast %40 : vector<1x128xf32> to vector<2x128xf32>
    %49 = arith.addf %47, %48 : vector<2x128xf32>
    %50 = tpu.iota {dimensions = array<i32: 1>} : vector<2x128xi32>
    %cst_27 = arith.constant 0.000000e+00 : f32
    %51 = vector.broadcast %cst_27 : f32 to vector<2x128xf32>
    %52 = arith.maximumf %49, %51 : vector<2x128xf32>
    %53 = math.absf %49 : vector<2x128xf32>
    %cst_28 = arith.constant 0.000000e+00 : f32
    %54 = vector.broadcast %cst_28 : f32 to vector<2x128xf32>
    %55 = arith.subf %54, %53 : vector<2x128xf32>
    %56 = math.exp %55 : vector<2x128xf32>
    %cst_29 = arith.constant 1.000000e+00 : f32
    %57 = vector.broadcast %cst_29 : f32 to vector<2x128xf32>
    %58 = arith.addf %57, %56 : vector<2x128xf32>
    %59 = math.log %58 : vector<2x128xf32>
    %60 = arith.addf %52, %59 : vector<2x128xf32>
    %cst_30 = arith.constant 9.99999974E-5 : f32
    %61 = vector.broadcast %cst_30 : f32 to vector<2x128xf32>
    %62 = arith.addf %60, %61 : vector<2x128xf32>
    %c32_i32 = arith.constant 32 : i32
    %63 = vector.broadcast %c32_i32 : i32 to vector<2x128xi32>
    %64 = arith.cmpi eq, %50, %63 : vector<2x128xi32>
    %65 = arith.select %64, %62, %49 : vector<2x128xi1>, vector<2x128xf32>
    %c0_31 = arith.constant 0 : index
    %c0_32 = arith.constant 0 : index
    %66 = vector.load %arg7[%c0_31, %c0_32] : memref<2x128xf32, #tpu.memory_space<vmem>>, vector<2x128xf32>
    tpu.vector_store %arg7[%c0_31, %c0_32], %65 {strides = array<i32>} : memref<2x128xf32, #tpu.memory_space<vmem>>, vector<2x128xf32>,
    return
  }
  func.func @transform_0(%arg0: i32) -> (i32, i32) {
    %c0_i32 = arith.constant 0 : i32
    %c0_i32_0 = arith.constant 0 : i32
    %c0_i32_1 = arith.constant 0 : i32
    return %c0_i32, %c0_i32_0 : i32, i32
  }
  func.func @transform_1(%arg0: i32) -> (i32, i32) {
    %c0_i32 = arith.constant 0 : i32
    %c0_i32_0 = arith.constant 0 : i32
    %c0_i32_1 = arith.constant 0 : i32
    return %c0_i32, %c0_i32_0 : i32, i32
  }
  func.func @transform_2(%arg0: i32) -> (i32, i32) {
    %c0_i32 = arith.constant 0 : i32
    %c0_i32_0 = arith.constant 0 : i32
    %c0_i32_1 = arith.constant 0 : i32
    return %c0_i32, %c0_i32_0 : i32, i32
  }
  func.func @transform_3(%arg0: i32) -> (i32, i32, i32) {
    %c0_i32 = arith.constant 0 : i32
    %c0_i32_0 = arith.constant 0 : i32
    %c0_i32_1 = arith.constant 0 : i32
    %c0_i32_2 = arith.constant 0 : i32
    return %c0_i32, %c0_i32_0, %c0_i32_1 : i32, i32, i32
  }
  func.func @transform_4(%arg0: i32) -> (i32, i32) {
    %c0_i32 = arith.constant 0 : i32
    %c0_i32_0 = arith.constant 0 : i32
    %c0_i32_1 = arith.constant 0 : i32
    return %c0_i32, %c0_i32_0 : i32, i32
  }
  func.func @transform_5(%arg0: i32) -> (i32, i32) {
    %c0_i32 = arith.constant 0 : i32
    %c0_i32_0 = arith.constant 0 : i32
    %c0_i32_1 = arith.constant 0 : i32
    return %c0_i32, %c0_i32_0 : i32, i32
  }
  func.func @transform_6(%arg0: i32) -> (i32, i32) {
    %c0_i32 = arith.constant 0 : i32
    %c0_i32_0 = arith.constant 0 : i32
    %c0_i32_1 = arith.constant 0 : i32
    return %c0_i32, %c0_i32_0 : i32, i32
  }
  func.func @transform_7(%arg0: i32) -> (i32, i32) {
    %c0_i32 = arith.constant 0 : i32
    %c0_i32_0 = arith.constant 0 : i32
    %c0_i32_1 = arith.constant 0 : i32
    return %c0_i32, %c0_i32_0 : i32, i32
  }
}

module attributes {stable_mosaic.version = 11 : i64} {
  func.func @_rank_kernel(%arg0: i32, %arg1: memref<16x40xf32, #tpu.memory_space<vmem>>, %arg2: memref<16x128xbf16, #tpu.memory_space<vmem>>, %arg3: memref<16x3xf32, #tpu.memory_space<vmem>>, %arg4: memref<512x384xbf16, #tpu.memory_space<vmem>>, %arg5: memref<8x384xf32, #tpu.memory_space<vmem>>, %arg6: memref<16x128xf32, #tpu.memory_space<vmem>>) attributes {dimension_semantics = [#tpu.dimension_semantics<parallel>], iteration_bounds = array<i64: 1>, scalar_prefetch = 0 : i64, scratch_operands = 0 : i64, tpu.core_type = #tpu.core_type<tc>, window_params = [{transform_indices = @transform_0, window_bounds = array<i64: 16, 40>}, {transform_indices = @transform_1, window_bounds = array<i64: 16, 128>}, {transform_indices = @transform_2, window_bounds = array<i64: 16, 3>}, {pipeline_mode = #tpu.pipeline_mode<synchronous>, transform_indices = @transform_3, window_bounds = array<i64: 512, 384>}, {pipeline_mode = #tpu.pipeline_mode<synchronous>, transform_indices = @transform_4, window_bounds = array<i64: 8, 384>}, {transform_indices = @transform_5, window_bounds = array<i64: 16, 128>}]} {
    %c0 = arith.constant 0 : index
    %c0_0 = arith.constant 0 : index
    %0 = vector.load %arg2[%c0, %c0_0] : memref<16x128xbf16, #tpu.memory_space<vmem>>, vector<16x128xbf16>
    %c0_1 = arith.constant 0 : index
    %c0_2 = arith.constant 0 : index
    %1 = vector.load %arg4[%c0_1, %c0_2] : memref<512x384xbf16, #tpu.memory_space<vmem>>, vector<128x384xbf16>
    %c128 = arith.constant 128 : index
    %c0_3 = arith.constant 0 : index
    %2 = vector.load %arg4[%c128, %c0_3] : memref<512x384xbf16, #tpu.memory_space<vmem>>, vector<384x384xbf16>
    %c0_4 = arith.constant 0 : index
    %c0_5 = arith.constant 0 : index
    %3 = vector.load %arg5[%c0_4, %c0_5] : memref<8x384xf32, #tpu.memory_space<vmem>>, vector<1x384xf32>
    %c1 = arith.constant 1 : index
    %c0_6 = arith.constant 0 : index
    %4 = vector.load %arg5[%c1, %c0_6] : memref<8x384xf32, #tpu.memory_space<vmem>>, vector<1x384xf32>
    %cst = arith.constant dense<0.000000e+00> : vector<16x384xf32>
    %5 = tpu.matmul %0, %1, %cst {dimension_numbers = #tpu.dot_dimension_numbers<[1], [0], [0], [1], [0, 0, 1, 1], [], []>} : vector<16x128xbf16>, vector<128x384xbf16>, vector<16x384xf32> -> vector<16x384xf32>
    %6 = vector.broadcast %3 : vector<1x384xf32> to vector<16x384xf32>
    %7 = arith.addf %5, %6 : vector<16x384xf32>
    %cst_7 = arith.constant 0.000000e+00 : f32
    %8 = vector.broadcast %cst_7 : f32 to vector<16x384xf32>
    %9 = arith.maximumf %7, %8 : vector<16x384xf32>
    %10 = arith.truncf %9 : vector<16x384xf32> to vector<16x384xbf16>
    %cst_8 = arith.constant dense<0.000000e+00> : vector<16x384xf32>
    %11 = tpu.matmul %10, %2, %cst_8 {dimension_numbers = #tpu.dot_dimension_numbers<[1], [0], [0], [1], [0, 0, 1, 1], [], []>} : vector<16x384xbf16>, vector<384x384xbf16>, vector<16x384xf32> -> vector<16x384xf32>
    %12 = vector.broadcast %4 : vector<1x384xf32> to vector<16x384xf32>
    %13 = arith.addf %11, %12 : vector<16x384xf32>
    %c0_9 = arith.constant 0 : index
    %c0_10 = arith.constant 0 : index
    %14 = vector.load %arg1[%c0_9, %c0_10] : memref<16x40xf32, #tpu.memory_space<vmem>>, vector<16x40xf32>
    %15 = vector.extract_strided_slice %14 {offsets = [0, 0], sizes = [16, 32], strides = [1, 1]} : vector<16x40xf32> to vector<16x32xf32>
    %16 = vector.extract_strided_slice %14 {offsets = [0, 32], sizes = [16, 1], strides = [1, 1]} : vector<16x40xf32> to vector<16x1xf32>
    %17 = math.log %16 : vector<16x1xf32>
    %18 = arith.mulf %16, %16 : vector<16x1xf32>
    %c0_11 = arith.constant 0 : index
    %c0_12 = arith.constant 0 : index
    %19 = vector.load %arg3[%c0_11, %c0_12] : memref<16x3xf32, #tpu.memory_space<vmem>>, vector<16x3xf32>
    %cst_13 = arith.constant 0.000000e+00 : f32
    %20 = vector.broadcast %cst_13 : f32 to vector<16x1xf32>
    %21 = vector.extract_strided_slice %13 {offsets = [0, 0], sizes = [16, 128], strides = [1, 1]} : vector<16x384xf32> to vector<16x128xf32>
    %22 = vector.extract_strided_slice %21 {offsets = [0, 0], sizes = [16, 32], strides = [1, 1]} : vector<16x128xf32> to vector<16x32xf32>
    %23 = vector.extract_strided_slice %21 {offsets = [0, 32], sizes = [16, 1], strides = [1, 1]} : vector<16x128xf32> to vector<16x1xf32>
    %cst_14 = arith.constant 0.000000e+00 : f32
    %24 = vector.broadcast %cst_14 : f32 to vector<16x1xf32>
    %25 = arith.maximumf %23, %24 : vector<16x1xf32>
    %26 = math.absf %23 : vector<16x1xf32>
    %cst_15 = arith.constant 0.000000e+00 : f32
    %27 = vector.broadcast %cst_15 : f32 to vector<16x1xf32>
    %28 = arith.subf %27, %26 : vector<16x1xf32>
    %29 = math.exp %28 : vector<16x1xf32>
    %cst_16 = arith.constant 1.000000e+00 : f32
    %30 = vector.broadcast %cst_16 : f32 to vector<16x1xf32>
    %31 = arith.addf %30, %29 : vector<16x1xf32>
    %32 = math.log %31 : vector<16x1xf32>
    %33 = arith.addf %25, %32 : vector<16x1xf32>
    %cst_17 = arith.constant 9.99999974E-5 : f32
    %34 = vector.broadcast %cst_17 : f32 to vector<16x1xf32>
    %35 = arith.addf %33, %34 : vector<16x1xf32>
    %36 = arith.subf %15, %22 : vector<16x32xf32>
    %37 = arith.mulf %36, %36 : vector<16x32xf32>
    %cst_18 = arith.constant dense<0.000000e+00> : vector<16xf32>
    %38 = vector.multi_reduction <add>, %37, %cst_18 [1] : vector<16x32xf32> to vector<16xf32>
    %39 = vector.shape_cast %38 : vector<16xf32> to vector<16x1xf32>
    %40 = math.log %35 : vector<16x1xf32>
    %41 = arith.subf %40, %17 : vector<16x1xf32>
    %cst_19 = arith.constant 3.200000e+01 : f32
    %42 = vector.broadcast %cst_19 : f32 to vector<16x1xf32>
    %43 = arith.mulf %42, %41 : vector<16x1xf32>
    %cst_20 = arith.constant 3.200000e+01 : f32
    %44 = vector.broadcast %cst_20 : f32 to vector<16x1xf32>
    %45 = arith.mulf %44, %18 : vector<16x1xf32>
    %46 = arith.addf %45, %39 : vector<16x1xf32>
    %cst_21 = arith.constant 2.000000e+00 : f32
    %47 = vector.broadcast %cst_21 : f32 to vector<16x1xf32>
    %48 = arith.mulf %47, %35 : vector<16x1xf32>
    %49 = arith.mulf %48, %35 : vector<16x1xf32>
    %50 = arith.divf %46, %49 : vector<16x1xf32>
    %51 = arith.addf %43, %50 : vector<16x1xf32>
    %cst_22 = arith.constant 1.600000e+01 : f32
    %52 = vector.broadcast %cst_22 : f32 to vector<16x1xf32>
    %53 = arith.subf %51, %52 : vector<16x1xf32>
    %54 = vector.extract_strided_slice %19 {offsets = [0, 0], sizes = [16, 1], strides = [1, 1]} : vector<16x3xf32> to vector<16x1xf32>
    %55 = arith.mulf %54, %53 : vector<16x1xf32>
    %56 = arith.addf %20, %55 : vector<16x1xf32>
    %57 = vector.extract_strided_slice %13 {offsets = [0, 128], sizes = [16, 128], strides = [1, 1]} : vector<16x384xf32> to vector<16x128xf32>
    %58 = vector.extract_strided_slice %57 {offsets = [0, 0], sizes = [16, 32], strides = [1, 1]} : vector<16x128xf32> to vector<16x32xf32>
    %59 = vector.extract_strided_slice %57 {offsets = [0, 32], sizes = [16, 1], strides = [1, 1]} : vector<16x128xf32> to vector<16x1xf32>
    %cst_23 = arith.constant 0.000000e+00 : f32
    %60 = vector.broadcast %cst_23 : f32 to vector<16x1xf32>
    %61 = arith.maximumf %59, %60 : vector<16x1xf32>
    %62 = math.absf %59 : vector<16x1xf32>
    %cst_24 = arith.constant 0.000000e+00 : f32
    %63 = vector.broadcast %cst_24 : f32 to vector<16x1xf32>
    %64 = arith.subf %63, %62 : vector<16x1xf32>
    %65 = math.exp %64 : vector<16x1xf32>
    %cst_25 = arith.constant 1.000000e+00 : f32
    %66 = vector.broadcast %cst_25 : f32 to vector<16x1xf32>
    %67 = arith.addf %66, %65 : vector<16x1xf32>
    %68 = math.log %67 : vector<16x1xf32>
    %69 = arith.addf %61, %68 : vector<16x1xf32>
    %cst_26 = arith.constant 9.99999974E-5 : f32
    %70 = vector.broadcast %cst_26 : f32 to vector<16x1xf32>
    %71 = arith.addf %69, %70 : vector<16x1xf32>
    %72 = arith.subf %15, %58 : vector<16x32xf32>
    %73 = arith.mulf %72, %72 : vector<16x32xf32>
    %cst_27 = arith.constant dense<0.000000e+00> : vector<16xf32>
    %74 = vector.multi_reduction <add>, %73, %cst_27 [1] : vector<16x32xf32> to vector<16xf32>
    %75 = vector.shape_cast %74 : vector<16xf32> to vector<16x1xf32>
    %76 = math.log %71 : vector<16x1xf32>
    %77 = arith.subf %76, %17 : vector<16x1xf32>
    %cst_28 = arith.constant 3.200000e+01 : f32
    %78 = vector.broadcast %cst_28 : f32 to vector<16x1xf32>
    %79 = arith.mulf %78, %77 : vector<16x1xf32>
    %cst_29 = arith.constant 3.200000e+01 : f32
    %80 = vector.broadcast %cst_29 : f32 to vector<16x1xf32>
    %81 = arith.mulf %80, %18 : vector<16x1xf32>
    %82 = arith.addf %81, %75 : vector<16x1xf32>
    %cst_30 = arith.constant 2.000000e+00 : f32
    %83 = vector.broadcast %cst_30 : f32 to vector<16x1xf32>
    %84 = arith.mulf %83, %71 : vector<16x1xf32>
    %85 = arith.mulf %84, %71 : vector<16x1xf32>
    %86 = arith.divf %82, %85 : vector<16x1xf32>
    %87 = arith.addf %79, %86 : vector<16x1xf32>
    %cst_31 = arith.constant 1.600000e+01 : f32
    %88 = vector.broadcast %cst_31 : f32 to vector<16x1xf32>
    %89 = arith.subf %87, %88 : vector<16x1xf32>
    %90 = vector.extract_strided_slice %19 {offsets = [0, 1], sizes = [16, 1], strides = [1, 1]} : vector<16x3xf32> to vector<16x1xf32>
    %91 = arith.mulf %90, %89 : vector<16x1xf32>
    %92 = arith.addf %56, %91 : vector<16x1xf32>
    %93 = vector.extract_strided_slice %13 {offsets = [0, 256], sizes = [16, 128], strides = [1, 1]} : vector<16x384xf32> to vector<16x128xf32>
    %94 = vector.extract_strided_slice %93 {offsets = [0, 0], sizes = [16, 32], strides = [1, 1]} : vector<16x128xf32> to vector<16x32xf32>
    %95 = vector.extract_strided_slice %93 {offsets = [0, 32], sizes = [16, 1], strides = [1, 1]} : vector<16x128xf32> to vector<16x1xf32>
    %cst_32 = arith.constant 0.000000e+00 : f32
    %96 = vector.broadcast %cst_32 : f32 to vector<16x1xf32>
    %97 = arith.maximumf %95, %96 : vector<16x1xf32>
    %98 = math.absf %95 : vector<16x1xf32>
    %cst_33 = arith.constant 0.000000e+00 : f32
    %99 = vector.broadcast %cst_33 : f32 to vector<16x1xf32>
    %100 = arith.subf %99, %98 : vector<16x1xf32>
    %101 = math.exp %100 : vector<16x1xf32>
    %cst_34 = arith.constant 1.000000e+00 : f32
    %102 = vector.broadcast %cst_34 : f32 to vector<16x1xf32>
    %103 = arith.addf %102, %101 : vector<16x1xf32>
    %104 = math.log %103 : vector<16x1xf32>
    %105 = arith.addf %97, %104 : vector<16x1xf32>
    %cst_35 = arith.constant 9.99999974E-5 : f32
    %106 = vector.broadcast %cst_35 : f32 to vector<16x1xf32>
    %107 = arith.addf %105, %106 : vector<16x1xf32>
    %108 = arith.subf %15, %94 : vector<16x32xf32>
    %109 = arith.mulf %108, %108 : vector<16x32xf32>
    %cst_36 = arith.constant dense<0.000000e+00> : vector<16xf32>
    %110 = vector.multi_reduction <add>, %109, %cst_36 [1] : vector<16x32xf32> to vector<16xf32>
    %111 = vector.shape_cast %110 : vector<16xf32> to vector<16x1xf32>
    %112 = math.log %107 : vector<16x1xf32>
    %113 = arith.subf %112, %17 : vector<16x1xf32>
    %cst_37 = arith.constant 3.200000e+01 : f32
    %114 = vector.broadcast %cst_37 : f32 to vector<16x1xf32>
    %115 = arith.mulf %114, %113 : vector<16x1xf32>
    %cst_38 = arith.constant 3.200000e+01 : f32
    %116 = vector.broadcast %cst_38 : f32 to vector<16x1xf32>
    %117 = arith.mulf %116, %18 : vector<16x1xf32>
    %118 = arith.addf %117, %111 : vector<16x1xf32>
    %cst_39 = arith.constant 2.000000e+00 : f32
    %119 = vector.broadcast %cst_39 : f32 to vector<16x1xf32>
    %120 = arith.mulf %119, %107 : vector<16x1xf32>
    %121 = arith.mulf %120, %107 : vector<16x1xf32>
    %122 = arith.divf %118, %121 : vector<16x1xf32>
    %123 = arith.addf %115, %122 : vector<16x1xf32>
    %cst_40 = arith.constant 1.600000e+01 : f32
    %124 = vector.broadcast %cst_40 : f32 to vector<16x1xf32>
    %125 = arith.subf %123, %124 : vector<16x1xf32>
    %126 = vector.extract_strided_slice %19 {offsets = [0, 2], sizes = [16, 1], strides = [1, 1]} : vector<16x3xf32> to vector<16x1xf32>
    %127 = arith.mulf %126, %125 : vector<16x1xf32>
    %128 = arith.addf %92, %127 : vector<16x1xf32>
    %cst_41 = arith.constant 0.000000e+00 : f32
    %129 = vector.broadcast %cst_41 : f32 to vector<16x1xf32>
    %130 = arith.subf %129, %128 : vector<16x1xf32>
    %131 = vector.shape_cast %130 : vector<16x1xf32> to vector<16x1xf32>
    %132 = vector.broadcast %131 : vector<16x1xf32> to vector<16x128xf32>
    %c0_42 = arith.constant 0 : index
    %c0_43 = arith.constant 0 : index
    %133 = vector.load %arg6[%c0_42, %c0_43] : memref<16x128xf32, #tpu.memory_space<vmem>>, vector<16x128xf32>
    tpu.vector_store %arg6[%c0_42, %c0_43], %132 {strides = array<i32>} : memref<16x128xf32, #tpu.memory_space<vmem>>, vector<16x128xf32>,
    return
  }
  func.func @transform_0(%arg0: i32) -> (i32, i32) {
    %c0_i32 = arith.constant 0 : i32
    %c0_i32_0 = arith.constant 0 : i32
    return %arg0, %c0_i32 : i32, i32
  }
  func.func @transform_1(%arg0: i32) -> (i32, i32) {
    %c0_i32 = arith.constant 0 : i32
    %c0_i32_0 = arith.constant 0 : i32
    return %arg0, %c0_i32 : i32, i32
  }
  func.func @transform_2(%arg0: i32) -> (i32, i32) {
    %c0_i32 = arith.constant 0 : i32
    %c0_i32_0 = arith.constant 0 : i32
    return %arg0, %c0_i32 : i32, i32
  }
  func.func @transform_3(%arg0: i32) -> (i32, i32) {
    %c0_i32 = arith.constant 0 : i32
    %c0_i32_0 = arith.constant 0 : i32
    %c0_i32_1 = arith.constant 0 : i32
    return %c0_i32, %c0_i32_0 : i32, i32
  }
  func.func @transform_4(%arg0: i32) -> (i32, i32) {
    %c0_i32 = arith.constant 0 : i32
    %c0_i32_0 = arith.constant 0 : i32
    %c0_i32_1 = arith.constant 0 : i32
    return %c0_i32, %c0_i32_0 : i32, i32
  }
  func.func @transform_5(%arg0: i32) -> (i32, i32) {
    %c0_i32 = arith.constant 0 : i32
    %c0_i32_0 = arith.constant 0 : i32
    return %arg0, %c0_i32 : i32, i32
  }
}

</mosaic_0001>

<bundles_post_ra>
// kernel: div.9
= control target key start
LH: loop header
LB: loop body
LE: loop exit
PB: predicated region body
PF: predicated region fallthrough
CT: control target
= control target key end

     0   :  { %vm7_vm0 = vcmask 31744   ;;  %vm13_vm1 = vcmask 64544   ;;  %s39_s0 = inlined_call_operand.vmem [shape: f32[2,4], index: 0, kind: input, shape index: {}]   ;;  %s40_s1 = inlined_call_operand.vmem [shape: f32[8], index: 1, kind: output, shape index: {}]  }
   0x1   :  { %v4_v0 = vld [vmem:[%s39_s0] sm:$0x3]  ;;  %s22_s0 = smov 4  }
   0x2   :  { %5 = vst [vmem:[#allocation1] sm:$0x3] %v4_v0 }
   0x9   :  { %v10_v1 = vld [vmem:[#allocation1 + $0x1] sm:$0x1]   ;;  %v6_v2 = vld [vmem:[#allocation1] sm:$0x1]  }
   0xa   :  { %11 = vrot.lane.b32.xlu0 %v10_v1, %s22_s0  ;;  %8 = vst.msk [vmem:[#allocation0] sm:$0x1] %vm7_vm0, %v6_v2  }
  0x7c   :  { %v12_v3 = vpop.permute.xlu0 %11  }
  0x7d   :  { %14 = vst.msk [vmem:[#allocation0] sm:$0x1] %vm13_vm1, %v12_v3  }
  0x84   :  { %v18_v4 = vld [vmem:[#allocation0] sm:$0x1] }
  0x85   :  { %20 = vst [vmem:[%s40_s1] sm:$0x1] %v18_v4 }

// kernel: squeeze.1
= control target key start
LH: loop header
LB: loop body
LE: loop exit
PB: predicated region body
PF: predicated region fallthrough
CT: control target
= control target key end

     0   :  { %vm7_vm0 = vcmask 31744   ;;  %s39_s0 = inlined_call_operand.vmem [shape: f32[8], index: 0, kind: input, shape index: {}]   ;;  %s40_s1 = inlined_call_operand.vmem [shape: f32[2,4], index: 1, kind: output, shape index: {}]  }
   0x1   :  { %v4_v0 = vld [vmem:[%s39_s0] sm:$0x1]  ;;  %s22_s0 = smov 124  }
   0x2   :  { %5 = vst [vmem:[#allocation1] sm:$0x1] %v4_v0 }
   0x9   :  { %v9_v1 = vld [vmem:[#allocation1] sm:$0x1]  }
   0xa   :  { %v6_v2 = vld [vmem:[#allocation1] sm:$0x1]   ;;  %10 = vrot.lane.b32.xlu0 %v9_v1, %s22_s0 }
   0xb   :  { %8 = vst.msk [vmem:[#allocation0] sm:$0x1] %vm7_vm0, %v6_v2  }
  0x7c   :  { %v11_v3 = vpop.permute.xlu0 %10  }
  0x7d   :  { %14 = vst.msk [vmem:[#allocation0 + $0x1] sm:$0x1] %vm7_vm0, %v11_v3  }
  0x84   :  { %v18_v4 = vld [vmem:[#allocation0] sm:$0x3] }
  0x85   :  { %20 = vst [vmem:[%s40_s1] sm:$0x3] %v18_v4 }

// kernel: lmc_acronym_expander_forward.2
= control target key start
LH: loop header
LB: loop body
LE: loop exit
PB: predicated region body
PF: predicated region fallthrough
CT: control target
= control target key end

     0   :  { %v35_v0 = vlaneseq  ;;  %v519_v1 = vmov 1966171168   ;;  %v520_v6 = vmov 0   ;;  %s684_s0 = inlined_call_operand.vmem [shape: s32[2,1], index: 0, kind: input, shape index: {}]   ;;  %s685_s1 = inlined_call_operand.vmem [shape: f32[2,32], index: 1, kind: input, shape index: {}]   ;;  %s686_s2 = inlined_call_operand.vmem [shape: f32[2,32], index: 2, kind: input, shape index: {}]   ;;  %s687_s3 = inlined_call_operand.vmem [shape: f32[2,8,32], index: 3, kind: input, shape index: {}]   ;;  %s688_s4 = inlined_call_operand.vmem [shape: bf16[224,128], index: 4, kind: input, shape index: {}]   ;;  %s689_s5 = inlined_call_operand.vmem [shape: f32[8,128], index: 5, kind: input, shape index: {}]   ;;  %s690_s6 = inlined_call_operand.vmem [shape: f32[2,128], index: 6, kind: output, shape index: {0}]   ;;  %s691_s7 = inlined_call_operand.hbm [shape: f32[2,128], index: 7, kind: output, shape index: {1}]  }
   0x1   :  { %v33_v2 = vunpack.c.l.s4 %v519_v1  ;;  %v77_v3 = vld [vmem:[%s684_s0] sm:$0x3]  ;;  %471 = vset.pattern.permute.xlu1 %v520_v6  ;;  %472 = vset.pattern.permute.xlu0 %v520_v6 }
   0x2   :  { %v572_v4 = vld [vmem:[%s686_s2] sm:$0x3]  ;;  %v36_v5 = vshrl.u32 %v35_v0, 7  ;;  %79 = vperm.xlu1 %471, %v77_v3  }
   0x3   :  { %v34_v7 = vunpack.c.0.s8 %v33_v2  ;;  %v578_v11 = vld [vmem:[%s687_s3] sm:$0xff] }
   0x4   :  { %v56_v8 = vsub.s32 0, %v36_v5 }
   0x5   :  { %v37_v9 = vsub.s32 %v34_v7, %v36_v5 }
   0x7   :  { %v38_v10 = vrot.slane %v572_v4, %v37_v9 }
   0x9   :  { %v46_v12 = vrot.slane %v38_v10, %v37_v9  ;;  %v39_v13 = vcombine.high %v38_v10, %v38_v10 }
   0xb   :  { %v57_v14 = vrot.slane %v46_v12, %v56_v8  ;;  %v53_v15 = vrot.slane %v39_v13, %v37_v9 }
   0xc   :  { %13 = vsyncpa [#allocation3], 0  ;;  %vm66_vm0 = vcmask 261120   ;;  %v583_v16 = vld [vmem:[%s687_s3 + $0x8] sm:$0xff]  ;;  %v589_v22 = vand.u32 127, %v35_v0  ;;  %vm92_vm1 = vcmask 1041409  }
   0xd   :  { %v64_v17 = vmul.f32 %v57_v14, %v578_v11  ;;  %v61_v18 = vrot.slane %v53_v15, %v56_v8  ;;  %vm96_vm3 = vcmask 58368   ;;  %vm110_vm4 = vcmask 64512   ;;  %v473_v48 = vld [vmem:[%s688_s4] sm:$0xff]   ;;  %s521_s8 = smov 64   ;;  %v474_v50 = vld [vmem:[%s688_s4 + $0x8] sm:$0xff]   ;;  %v475_v51 = vld [vmem:[%s688_s4 + $0x10] sm:$0xff]  }
   0xe   :  { %v86_v24 = vsub.s32 %v589_v22, %v36_v5  ;;  %v122_v45 = vsub.s32 1, %v36_v5  ;;  %v522_v49 = vmov 0.0   ;;  %v476_v52 = vld [vmem:[%s688_s4 + $0x18] sm:$0xff]   ;;  %v477_v53 = vld [vmem:[%s688_s4 + $0x20] sm:$0xff]   ;;  %v478_v62 = vld [vmem:[%s688_s4 + $0x28] sm:$0xff]   ;;  %vm523_vm5 = vmmov 0  }
   0xf   :  { %v67_v19 = vsel %vm66_vm0, %v64_v17, 0.0  ;;  %v65_v20 = vmul.f32 %v61_v18, %v583_v16  ;;  %428 = vmatprep.subr.bf16.mxu0 %v522_v49  ;;  %444 = vmatprep.subr.bf16.mxu1 %v522_v49  ;;  %v480_v7 = vld [vmem:[%s688_s4 + $0x38] sm:$0xff]   ;;  %s524_s25 = smov 32   ;;  %v482_v13 = vld [vmem:[%s688_s4 + $0x48] sm:$0xff]   ;;  %v483_v14 = vld [vmem:[%s688_s4 + $0x50] sm:$0xff]   ;;  %vm153_vm6 = vcmask 523264  }
  0x10   :  { %68 = vadd.xlane.f32.xlu0 %v67_v19  ;;  %429 = vmatpush3.bf16.msra.mxu0 %v473_v48  ;;  %v484_v15 = vld [vmem:[%s688_s4 + $0x58] sm:$0xff]   ;;  %vm226_vm7 = vcmask 785408   ;;  %s525_s13 = smov [#allocation2]  }
  0x11   :  { %v70_v21 = vsel %vm66_vm0, %v65_v20, 0.0  ;;  %430 = vmatprep.subr.bf16.mxu0 %v522_v49  ;;  %440 = vmatprep.mubr.msk.bf16.mxu0 %vm523_vm5, %v522_v49  ;;  %s385_s14 = sshll.u32 %s525_s13, 4  ;;  %s386_s14 = int_to_ptr.vmem [resolvable:$true] %s385_s14 }
  0x12   :  { %460 = vmatprep.mubr.msk.bf16.mxu1 %vm523_vm5, %v522_v49  ;;  %s495_s15 = scalar_lea.vmem %s386_s14, 32  ;;  %p500_p1 = scmp.lt.s32.totalorder %s386_s14, %s386_s14 }
  0x13   :  { %p496_p0 = scmp.ne.s32.totalorder %s386_s14, %s495_s15  ;;  %p501_p2 = scmp.lt.s32.totalorder %s495_s15, %s495_s15 }
  0x14   :  { %71 = vadd.xlane.f32.xlu0 %v70_v21  ;;  %431 = vmatpush3.bf16.msra.mxu0 %v474_v50 }
  0x15   :  { %432 = vmatprep.subr.bf16.mxu0 %v522_v49  ;;  %p502_p3 = por %p501_p2, %p500_p1 }
  0x17   :  { %p503_p4 = pnand %p502_p3, %p496_p0 }
  0x18   :  { %433 = vmatpush3.bf16.msra.mxu0 %v475_v51 }
  0x19   :  { %434 = vmatprep.subr.bf16.mxu0 %v522_v49 }
  0x1c   :  { %435 = vmatpush3.bf16.msra.mxu0 %v476_v52 }
  0x1d   :  { %436 = vmatprep.subr.bf16.mxu0 %v522_v49 }
  0x20   :  { %437 = vmatpush3.bf16.msra.mxu0 %v477_v53 }
  0x21   :  { %438 = vmatprep.subr.bf16.mxu0 %v522_v49 }
  0x24   :  { %439 = vmatpush3.bf16.msra.mxu0 %v478_v62 }
  0x81   :  { %v80_v27 = vpop.permute.xlu1 %79 }
  0x82   :  { %vm81_vm2 = vcmp.ge.s32.totalorder %v589_v22, %v80_v27 }
  0x9d   :  { %v69_v23 = vpop.xlane.xlu0 %68 }
  0x9e   :  { %v73_v25 = vmul.f32 0.17677669, %v69_v23  ;;  %v485_v23 = vld [vmem:[%s688_s4 + $0x60] sm:$0xff]  }
  0xa0   :  { %v87_v29 = vrot.slane %v73_v25, %v86_v24  ;;  %v395_v25 = vld [vmem:[%s689_s5] ss:$0 sm:$0xff] }
  0xa1   :  { %v72_v26 = vpop.xlane.xlu0 %71 }
  0xa2   :  { %v74_v28 = vmul.f32 0.17677669, %v72_v26 }
  0xa4   :  { %v91_v30 = vrot.slane %v74_v28, %v86_v24  ;;  %v486_v24 = vld [vmem:[%s688_s4 + $0x68] sm:$0xff]  }
  0xa6   :  { %v93_v31 = vsel %vm92_vm1, %v91_v30, %v87_v29 }
  0xa7   :  { %v95_v32 = vsel %vm81_vm2, -1e+30, %v93_v31 }
  0xa8   :  { %v97_v33 = vsel %vm96_vm3, %v95_v32, -inf }
  0xa9   :  { %98 = vmax.xlane.f32.xlu1 %v97_v33 }
  0xba   :  { %149 = vrot.lane.b32.xlu1 %v572_v4, %s521_s8  ;;  %v479_v4 = vld [vmem:[%s688_s4 + $0x30] sm:$0xff]  }
  0xbb   :  { %445 = vmatpush3.bf16.msra.mxu1 %v479_v4 }
  0xbc   :  { %446 = vmatprep.subr.bf16.mxu1 %v522_v49 }
  0xbf   :  { %447 = vmatpush3.bf16.msra.mxu1 %v480_v7 }
  0xc0   :  { %448 = vmatprep.subr.bf16.mxu1 %v522_v49 }
 0x136   :  { %v99_v34 = vpop.xlane.xlu1 %98 }
 0x137   :  { %v100_v35 = vsub.f32 %v95_v32, %v99_v34 }
 0x139   :  { %v101_v36 = vmul.f32 1.442695, %v100_v35 }
 0x13a   :  { %v150_v17 = vpop.permute.xlu1 %149 }
 0x13b   :  { %487 = vpow2.f32 %v101_v36 }
 0x145   :  { %v488_v37 = vpop.eup %487 }
 0x146   :  { %v103_v38 = vsel %vm81_vm2, 0.0, %v488_v37 }
 0x147   :  { %v104_v39 = vsel %vm96_vm3, %v103_v38, 0.0 }
 0x148   :  { %105 = vadd.xlane.f32.xlu0 %v104_v39 }
 0x1d5   :  { %v106_v40 = vpop.xlane.xlu0 %105 }
 0x1d6   :  { %v107_v41 = vmax.f32 %v106_v40, 1e-30 }
 0x1d8   :  { %489 = vrcp.f32 %v107_v41 }
 0x1e2   :  { %v490_v42 = vpop.eup %489 }
 0x1e3   :  { %v109_v43 = vmul.f32 %v490_v42, %v103_v38 }
 0x1e5   :  { %v116_v44 = vrot.slane %v109_v43, %v56_v8  ;;  %v111_v46 = vsel %vm110_vm4, %v109_v43, 0.0  ;;  %v123_v47 = vrot.slane %v109_v43, %v122_v45 }
 0x1e6   :  { %112 = vst [vmem:[#allocation2] sm:$0x3] %v111_v46 }
 0x1e7   :  { %118 = vbcast.lane.b32.xlu0 %v116_v44, 256 }
 0x1eb   :  { %125 = vbcast.lane.b32.xlu0 %v123_v47, 256 }
 0x259   :  { %v119_v54 = vpop.permute.xlu0 %118 }
 0x25a   :  { %v127_v55 = vmul.f32 %v119_v54, %v578_v11  ;;  %v481_v11 = vld [vmem:[%s688_s4 + $0x40] sm:$0xff]  }
 0x25b   :  { %449 = vmatpush3.bf16.msra.mxu1 %v481_v11 }
 0x25c   :  { %v129_v56 = vsel %vm66_vm0, %v127_v55, 0.0  ;;  %450 = vmatprep.subr.bf16.mxu1 %v522_v49 }
 0x25d   :  { %v130_v57 = vrot.slane %v129_v56, 4  ;;  %v126_v58 = vpop.permute.xlu0 %125 }
 0x25e   :  { %v128_v59 = vmul.f32 %v126_v58, %v583_v16  ;;  %v27_v16 = vld [vmem:[%s685_s1] sm:$0x3] }
 0x25f   :  { %v131_v60 = vadd.f32 %v130_v57, %v129_v56  ;;  %451 = vmatpush3.bf16.msra.mxu1 %v482_v13 }
 0x260   :  { %v136_v61 = vsel %vm66_vm0, %v128_v59, 0.0  ;;  %452 = vmatprep.subr.bf16.mxu1 %v522_v49 }
 0x261   :  { %v132_v63 = vrot.slane %v131_v60, 2  ;;  %v137_v0 = vrot.slane %v136_v61, 4 }
 0x263   :  { %v133_v1 = vadd.f32 %v132_v63, %v131_v60  ;;  %v138_v2 = vadd.f32 %v137_v0, %v136_v61  ;;  %453 = vmatpush3.bf16.msra.mxu1 %v483_v14 }
 0x264   :  { %454 = vmatprep.subr.bf16.mxu1 %v522_v49 }
 0x265   :  { %v139_v3 = vrot.slane %v138_v2, 2  ;;  %v134_v5 = vrot.slane %v133_v1, 1 }
 0x267   :  { %v140_v6 = vadd.f32 %v139_v3, %v138_v2  ;;  %v135_v9 = vadd.f32 %v134_v5, %v133_v1  ;;  %455 = vmatpush3.bf16.msra.mxu1 %v484_v15 }
 0x268   :  { %456 = vmatprep.subr.bf16.mxu1 %v522_v49 }
 0x269   :  { %v141_v8 = vrot.slane %v140_v6, 1 }
 0x26b   :  { %v142_v10 = vadd.f32 %v141_v8, %v140_v6  ;;  %457 = vmatpush3.bf16.msra.mxu1 %v485_v23 }
 0x26c   :  { %458 = vmatprep.subr.bf16.mxu1 %v522_v49 }
 0x26d   :  { %v145_v12 = vsel %vm92_vm1, %v142_v10, %v135_v9 }
 0x26e   :  { %146 = vrot.lane.b32.xlu0 %v145_v12, %s524_s25 }
 0x26f   :  { %459 = vmatpush3.bf16.msra.mxu1 %v486_v24 }
 0x2e0   :  { %v147_v18 = vpop.permute.xlu0 %146 }
 0x2e1   :  { %v152_v19 = vsel %vm66_vm0, %v27_v16, %v147_v18 }
 0x2e2   :  { %v154_v20 = vsel %vm153_vm6, %v152_v19, %v150_v17 }
 0x2e3   :  { %v155_v21 = vpack.c.bf16 %v154_v20, %v154_v20 }
 0x2e5   :  { %441 = vmatmul.mubr.msk.bf16.vlgmr.msra.gmra.mrb[0].mxu0 %vm226_vm7, %v155_v21 }
 0x3b8   :  { %v264_v26 = vpop.f32.mrb[0].mxu0 }
 0x3b9   :  { %v265_v27 = vadd.f32 %v395_v25, %v264_v26  ;;  %v442_v28 = vpop.f32.mrb[1].mxu0 }
 0x3ba   :  { %v267_v29 = vpop.f32.mrb[2].mxu0 }
 0x3bb   :  { %v270_v30 = vmax.f32 %v265_v27, 0.0  ;;  %v443_v31 = vpop.f32.mrb[3].mxu0 }
 0x3bd   :  { %v271_v32 = vpack.c.bf16 %v270_v30, %v270_v30 }
 0x3bf   :  { %461 = vmatmul.mubr.bf16.vlgmr.msra.gmra.mrb[0].mxu1 %v271_v32 }
 0x3c0   :  { %506 = shalt.err (!%p503_p4)
}
 0x3c1   :  { %s507_s17 = scalar_lea.hbm %s691_s7, 32 }
 0x3c2   :  { %p508_p5 = scmp.ne.s32.totalorder %s691_s7, %s507_s17  ;;  %p511_p6 = scmp.lt.u32.totalorder %s507_s17, %s691_s7 }
 0x3c4   :  { %p513_p7 = pnand %p511_p6, %p508_p5 }
 0x3c6   :  { %516 = shalt.err (!%p513_p7)
}
 0x3c7   :  { %388 = dma.vmem_to_hbm [thread:$0]  %s386_s14, 32, %s691_s7, [#allocation3]   ;;  %v403_v33 = vld [vmem:[%s689_s5 + $0x1] ss:$0 sm:$0xff]  ;;  %vm374_vm8 = vcmp.eq.s32.totalorder %v589_v22, 32 }
 0x492   :  { %v358_v34 = vpop.f32.mrb[0].mxu1 }
 0x493   :  { %v359_v35 = vadd.f32 %v403_v33, %v358_v34  ;;  %v462_v36 = vpop.f32.mrb[1].mxu1 }
 0x494   :  { %v361_v37 = vpop.f32.mrb[2].mxu1 }
 0x495   :  { %v365_v38 = vand.u32 2147483647, %v359_v35  ;;  %v463_v39 = vpop.f32.mrb[3].mxu1  ;;  %v364_v45 = vmax.f32 %v359_v35, 0.0 }
 0x497   :  { %v366_v40 = vsub.f32 0.0, %v365_v38 }
 0x499   :  { %v367_v41 = vmul.f32 1.442695, %v366_v40 }
 0x49b   :  { %491 = vpow2.f32 %v367_v41 }
 0x4a5   :  { %v492_v42 = vpop.eup %491 }
 0x4a6   :  { %v369_v43 = vadd.f32 1.0, %v492_v42 }
 0x4a8   :  { %493 = vlog2.f32 %v369_v43 }
 0x4b2   :  { %v494_v44 = vpop.eup %493 }
 0x4b3   :  { %v371_v46 = vmul.f32 0.6931472, %v494_v44 }
 0x4b5   :  { %v372_v47 = vadd.f32 %v371_v46, %v364_v45 }
 0x4b7   :  { %v373_v48 = vadd.f32 0.0001, %v372_v47 }
 0x4b9   :  { %v375_v49 = vsel %vm374_vm8, %v373_v48, %v359_v35 }
 0x4ba   :  { %376 = vst [vmem:[%s690_s6] sm:$0x3] %v375_v49 }
 0x4bb   :  { %517 = dma.done.wait [#allocation3], 32  }
 0x4bc   :  { %518 = vsyncadd [#allocation3], 4294967264 }
 0x4bd   :  { %394 = vsyncpa [#allocation3], 1 }

// kernel: lmc_acronym_expander_forward.3
= control target key start
LH: loop header
LB: loop body
LE: loop exit
PB: predicated region body
PF: predicated region fallthrough
CT: control target
= control target key end

     0   :  { %v1587_v1 = vmov 0.0   ;;  %v1588_v2 = vmov 0   ;;  %vm1589_vm0 = vmmov 0   ;;  %vm999_vm1 = vcmask 261120   ;;  %s1591_s12 = smov 97   ;;  %s1592_s13 = smov 96   ;;  %s2040_s3 = inlined_call_operand.vmem [shape: bf16[512,384], index: 3, kind: input, shape index: {}]   ;;  %s2041_s1 = inlined_call_operand.vmem [shape: bf16[16,128], index: 1, kind: input, shape index: {}]   ;;  %s2042_s4 = inlined_call_operand.vmem [shape: f32[8,384], index: 4, kind: input, shape index: {}]   ;;  %s2043_s0 = inlined_call_operand.vmem [shape: f32[16,40], index: 0, kind: input, shape index: {}]   ;;  %s2044_s2 = inlined_call_operand.vmem [shape: f32[16,3], index: 2, kind: input, shape index: {}]   ;;  %s2045_s5 = inlined_call_operand.vmem [shape: f32[16,128], index: 5, kind: output, shape index: {}]  }
   0x1   :  { %v1406_v0 = vld [vmem:[%s2040_s3 + $0x4] ss:$12 sps:$4 sm:$0xff]   ;;  %1348 = vmatprep.subr.bf16.mxu1 %v1587_v1  ;;  %336 = vmatprep.mubr.bf16.mxu0 %v1588_v2  ;;  %v1408_v3 = vld [vmem:[%s2040_s3] ss:$12 sps:$4 sm:$0xff]   ;;  %v1409_v4 = vld [vmem:[%s2040_s3 + $0x1c] ss:$12 sps:$4 sm:$0xff]  }
   0x2   :  { %1364 = vmatprep.mubr.msk.bf16.mxu1 %vm1589_vm0, %v1587_v1  ;;  %1404 = vset.pattern.permute.xlu0 %v1588_v2  ;;  %v1411_v5 = vld [vmem:[%s2040_s3 + $0x18] ss:$12 sps:$4 sm:$0xff]   ;;  %v1412_v6 = vld [vmem:[%s2040_s3 + $0x34] ss:$12 sps:$4 sm:$0xff]   ;;  %v1414_v7 = vld [vmem:[%s2040_s3 + $0x30] ss:$12 sps:$4 sm:$0xff]  }
   0x3   :  { %304 = vmatprep.subr.bf16.mxu0 %v1406_v0  ;;  %1405 = vset.pattern.permute.xlu1 %v1588_v2  ;;  %v1415_v8 = vld [vmem:[%s2040_s3 + $0x4c] ss:$12 sps:$4 sm:$0xff]   ;;  %v1417_v9 = vld [vmem:[%s2040_s3 + $0x48] ss:$12 sps:$4 sm:$0xff]   ;;  %v1418_v11 = vld [vmem:[%s2040_s3 + $0x64] ss:$12 sps:$4 sm:$0xff]  }
   0x4   :  { %305 = vmatpush1.bf16.msra.mxu0 %v1408_v3  ;;  %v1430_v10 = vld [vmem:[%s2040_s3 + $0x8] ss:$12 sps:$4 sm:$0xff]   ;;  %v1432_v12 = vld [vmem:[%s2040_s3 + $0x20] ss:$12 sps:$4 sm:$0xff]   ;;  %v1433_v15 = vld [vmem:[%s2040_s3 + $0x38] ss:$12 sps:$4 sm:$0xff]  }
   0x5   :  { %306 = vmatprep.subr.bf16.mxu0 %v1409_v4  ;;  %1349 = vmatpush3.bf16.msra.mxu1 %v1430_v10  ;;  %v1420_v13 = vld [vmem:[%s2040_s3 + $0x60] ss:$12 sps:$4 sm:$0xff]   ;;  %v1421_v14 = vld [vmem:[%s2040_s3 + $0x7c] ss:$12 sps:$4 sm:$0xff]   ;;  %v1423_v16 = vld [vmem:[%s2040_s3 + $0x78] ss:$12 sps:$4 sm:$0xff]  }
   0x6   :  { %1350 = vmatprep.subr.bf16.mxu1 %v1587_v1  ;;  %v1424_v17 = vld [vmem:[%s2040_s3 + $0x94] ss:$12 sps:$4 sm:$0xff]   ;;  %v1434_v18 = vld [vmem:[%s2040_s3 + $0x50] ss:$12 sps:$4 sm:$0xff]   ;;  %v1427_v20 = vld [vmem:[%s2040_s3 + $0xac] ss:$12 sps:$4 sm:$0xff]  }
   0x7   :  { %v1426_v19 = vld [vmem:[%s2040_s3 + $0x90] ss:$12 sps:$4 sm:$0xff]   ;;  %v1435_v21 = vld [vmem:[%s2040_s3 + $0x68] ss:$12 sps:$4 sm:$0xff]   ;;  %v1436_v24 = vld [vmem:[%s2040_s3 + $0x80] ss:$12 sps:$4 sm:$0xff]  }
   0x8   :  { %307 = vmatpush1.bf16.msra.mxu0 %v1411_v5  ;;  %v1429_v22 = vld [vmem:[%s2040_s3 + $0xa8] ss:$12 sps:$4 sm:$0xff]   ;;  %v1441_v23 = vld [vmem:[%s2040_s3 + $0xc4] ss:$12 sps:$4 sm:$0xff]   ;;  %v1439_v26 = vld [vmem:[%s2040_s3 + $0xc0] ss:$12 sps:$4 sm:$0xff]  }
   0x9   :  { %308 = vmatprep.subr.bf16.mxu0 %v1412_v6  ;;  %1351 = vmatpush3.bf16.msra.mxu1 %v1432_v12  ;;  %v1431_v25 = vld [vmem:[%s2041_s1] sm:$0xff]   ;;  %v1444_v27 = vld [vmem:[%s2040_s3 + $0xdc] ss:$12 sps:$4 sm:$0xff]   ;;  %v1450_v34 = vld [vmem:[%s2040_s3 + $0x10c] ss:$12 sps:$4 sm:$0xff]   ;;  %s1593_s18 = smov 127  }
   0xa   :  { %1352 = vmatprep.subr.bf16.mxu1 %v1587_v1  ;;  %v1437_v28 = vld [vmem:[%s2040_s3 + $0x98] ss:$12 sps:$4 sm:$0xff]   ;;  %v1447_v30 = vld [vmem:[%s2040_s3 + $0xf4] ss:$12 sps:$4 sm:$0xff]   ;;  %v1438_v31 = vld [vmem:[%s2040_s3 + $0xb0] ss:$12 sps:$4 sm:$0xff]  }
   0xb   :  { %v1442_v29 = vld [vmem:[%s2040_s3 + $0xd8] ss:$12 sps:$4 sm:$0xff]   ;;  %v1466_v32 = vld [vmem:[%s2040_s3 + $0x188] ss:$12 sps:$4 sm:$0xff]   ;;  %v1445_v33 = vld [vmem:[%s2040_s3 + $0xf0] ss:$12 sps:$4 sm:$0xff]  }
   0xc   :  { %309 = vmatpush1.bf16.msra.mxu0 %v1414_v7  ;;  %v1467_v35 = vld [vmem:[%s2040_s3 + $0xc8] ss:$12 sps:$4 sm:$0xff]   ;;  %v1471_v36 = vld [vmem:[%s2040_s3 + $0x1a0] ss:$12 sps:$4 sm:$0xff]   ;;  %v1453_v38 = vld [vmem:[%s2040_s3 + $0x124] ss:$12 sps:$4 sm:$0xff]  }
   0xd   :  { %310 = vmatprep.subr.bf16.mxu0 %v1415_v8  ;;  %1353 = vmatpush3.bf16.msra.mxu1 %v1433_v15  ;;  %v1448_v37 = vld [vmem:[%s2040_s3 + $0x108] ss:$12 sps:$4 sm:$0xff]   ;;  %v1472_v39 = vld [vmem:[%s2040_s3 + $0xe0] ss:$12 sps:$4 sm:$0xff]   ;;  %v1476_v40 = vld [vmem:[%s2040_s3 + $0x1b8] ss:$12 sps:$4 sm:$0xff]  }
   0xe   :  { %1354 = vmatprep.subr.bf16.mxu1 %v1587_v1  ;;  %v1451_v41 = vld [vmem:[%s2040_s3 + $0x120] ss:$12 sps:$4 sm:$0xff]   ;;  %v1456_v42 = vld [vmem:[%s2040_s3 + $0x13c] ss:$12 sps:$4 sm:$0xff]   ;;  %v1454_v43 = vld [vmem:[%s2040_s3 + $0x138] ss:$12 sps:$4 sm:$0xff]  }
   0xf   :  { %v1477_v44 = vld [vmem:[%s2040_s3 + $0xf8] ss:$12 sps:$4 sm:$0xff]   ;;  %v1459_v45 = vld [vmem:[%s2040_s3 + $0x154] ss:$12 sps:$4 sm:$0xff]   ;;  %v1481_v46 = vld [vmem:[%s2040_s3 + $0x1d0] ss:$12 sps:$4 sm:$0xff]  }
  0x10   :  { %311 = vmatpush1.bf16.msra.mxu0 %v1417_v9  ;;  %v1482_v47 = vld [vmem:[%s2040_s3 + $0x110] ss:$12 sps:$4 sm:$0xff]   ;;  %v1486_v48 = vld [vmem:[%s2040_s3 + $0x1e8] ss:$12 sps:$4 sm:$0xff]   ;;  %v1462_v50 = vld [vmem:[%s2040_s3 + $0x16c] ss:$12 sps:$4 sm:$0xff]  }
  0x11   :  { %312 = vmatprep.subr.bf16.mxu0 %v1418_v11  ;;  %1355 = vmatpush3.bf16.msra.mxu1 %v1434_v18  ;;  %v1457_v49 = vld [vmem:[%s2040_s3 + $0x150] ss:$12 sps:$4 sm:$0xff]   ;;  %v1487_v51 = vld [vmem:[%s2040_s3 + $0x128] ss:$12 sps:$4 sm:$0xff]   ;;  %v1491_v52 = vld [vmem:[%s2040_s3 + $0x200] ss:$12 sps:$4 sm:$0xff]  }
  0x12   :  { %1356 = vmatprep.subr.bf16.mxu1 %v1587_v1  ;;  %v1460_v53 = vld [vmem:[%s2040_s3 + $0x168] ss:$12 sps:$4 sm:$0xff]   ;;  %v1465_v54 = vld [vmem:[%s2040_s3 + $0x184] ss:$12 sps:$4 sm:$0xff]   ;;  %v1492_v55 = vld [vmem:[%s2040_s3 + $0x140] ss:$12 sps:$4 sm:$0xff]  }
  0x13   :  { %v1463_v56 = vld [vmem:[%s2040_s3 + $0x180] ss:$12 sps:$4 sm:$0xff]   ;;  %v1470_v57 = vld [vmem:[%s2040_s3 + $0x19c] ss:$12 sps:$4 sm:$0xff]   ;;  %v1468_v58 = vld [vmem:[%s2040_s3 + $0x198] ss:$12 sps:$4 sm:$0xff]  }
  0x14   :  { %313 = vmatpush1.bf16.msra.mxu0 %v1420_v13  ;;  %v1475_v59 = vld [vmem:[%s2040_s3 + $0x1b4] ss:$12 sps:$4 sm:$0xff]   ;;  %v1473_v60 = vld [vmem:[%s2040_s3 + $0x1b0] ss:$12 sps:$4 sm:$0xff]   ;;  %v1480_v61 = vld [vmem:[%s2040_s3 + $0x1cc] ss:$12 sps:$4 sm:$0xff]  }
  0x15   :  { %314 = vmatprep.subr.bf16.mxu0 %v1421_v14  ;;  %1357 = vmatpush3.bf16.msra.mxu1 %v1435_v21  ;;  %v1478_v62 = vld [vmem:[%s2040_s3 + $0x1c8] ss:$12 sps:$4 sm:$0xff]   ;;  %v1485_v63 = vld [vmem:[%s2040_s3 + $0x1e4] ss:$12 sps:$4 sm:$0xff]   ;;  %v1483_v0 = vld [vmem:[%s2040_s3 + $0x1e0] ss:$12 sps:$4 sm:$0xff]   ;;  %v155_v14 = vlaneseq }
  0x16   :  { %1358 = vmatprep.subr.bf16.mxu1 %v1587_v1  ;;  %v1490_v3 = vld [vmem:[%s2040_s3 + $0x1fc] ss:$12 sps:$4 sm:$0xff]   ;;  %v1488_v4 = vld [vmem:[%s2040_s3 + $0x1f8] ss:$12 sps:$4 sm:$0xff]   ;;  %v1495_v5 = vld [vmem:[%s2040_s3 + $0x214] ss:$12 sps:$4 sm:$0xff]  }
  0x17   :  { %v1496_v6 = vld [vmem:[%s2040_s3 + $0x218] ss:$12 sps:$4 sm:$0xff]   ;;  %v1493_v7 = vld [vmem:[%s2040_s3 + $0x210] ss:$12 sps:$4 sm:$0xff]   ;;  %v1498_v11 = vld [vmem:[%s2040_s3 + $0x228] ss:$12 sps:$4 sm:$0xff]  }
  0x18   :  { %315 = vmatpush1.bf16.msra.mxu0 %v1423_v16  ;;  %v1497_v8 = vld [vmem:[%s2040_s3 + $0x158] ss:$12 sps:$4 sm:$0xff]   ;;  %v1501_v10 = vld [vmem:[%s2040_s3 + $0x230] ss:$12 sps:$4 sm:$0xff]   ;;  %v1861_v15 = vshrl.u32 %v155_v14, 7  ;;  %s1594_s19 = smov 126  }
  0x19   :  { %316 = vmatprep.subr.bf16.mxu0 %v1424_v17  ;;  %1359 = vmatpush3.bf16.msra.mxu1 %v1436_v24  ;;  %v1500_v9 = vld [vmem:[%s2040_s3 + $0x22c] ss:$12 sps:$4 sm:$0xff]   ;;  %v1502_v12 = vld [vmem:[%s2040_s3 + $0x170] ss:$12 sps:$4 sm:$0xff]  }
  0x1a   :  { %1360 = vmatprep.subr.bf16.mxu1 %v1587_v1  ;;  %v1505_v13 = vld [vmem:[%s2040_s3 + $0x244] ss:$12 sps:$4 sm:$0xff]   ;;  %v157_v16 = vsub.s32 0, %v1861_v15  ;;  %v161_v18 = vsub.s32 1, %v1861_v15 }
  0x1b   :  { %v151_v17 = vld [vmem:[%s2042_s4] ss:$8 sm:$0x7] }
  0x1c   :  { %317 = vmatpush1.bf16.msra.mxu0 %v1426_v19  ;;  %v158_v19 = vrot.slane %v151_v17, %v157_v16 }
  0x1d   :  { %318 = vmatprep.subr.bf16.mxu0 %v1427_v20  ;;  %1361 = vmatpush3.bf16.msra.mxu1 %v1437_v28  ;;  %v162_v20 = vrot.slane %v151_v17, %v161_v18  ;;  %v165_v28 = vsub.s32 2, %v1861_v15 }
  0x1e   :  { %1362 = vmatprep.subr.bf16.mxu1 %v1587_v1 }
  0x20   :  { %319 = vmatpush1.bf16.msra.mxu0 %v1429_v22 }
  0x21   :  { %797 = vmatprep.subr.bf16.mxu0 %v1441_v23  ;;  %1363 = vmatpush3.bf16.msra.mxu1 %v1438_v31 }
  0x22   :  { %1317 = vmatprep.subr.bf16.mxu1 %v1466_v32 }
  0x23   :  { %337 = vmatmul.mubr.bf16.vlgmr.msra.gmra.mrb[0].mxu0 %v1431_v25 }
  0x24   :  { %798 = vmatpush1.bf16.msra.mxu0 %v1439_v26  ;;  %1365 = vmatmul.mubr.bf16.vlgmr.msra.gmra.mrb[0].mxu1 %v1431_v25 }
  0x25   :  { %799 = vmatprep.subr.bf16.mxu0 %v1444_v27  ;;  %1318 = vmatpush3.bf16.msra.mxu1 %v1467_v35  ;;  %v166_v35 = vrot.slane %v151_v17, %v165_v28 }
  0x26   :  { %1319 = vmatprep.subr.bf16.mxu1 %v1471_v36 }
  0x28   :  { %800 = vmatpush1.bf16.msra.mxu0 %v1442_v29 }
  0x29   :  { %801 = vmatprep.subr.bf16.mxu0 %v1447_v30  ;;  %1320 = vmatpush3.bf16.msra.mxu1 %v1472_v39  ;;  %v1509_v39 = vld [vmem:[%s2040_s3 + $0x25c] ss:$12 sps:$4 sm:$0xff]  }
  0x2a   :  { %1321 = vmatprep.subr.bf16.mxu1 %v1476_v40 }
  0x2c   :  { %802 = vmatpush1.bf16.msra.mxu0 %v1445_v33 }
  0x2d   :  { %803 = vmatprep.subr.bf16.mxu0 %v1450_v34  ;;  %1322 = vmatpush3.bf16.msra.mxu1 %v1477_v44  ;;  %v1510_v44 = vld [vmem:[%s2040_s3 + $0x260] ss:$12 sps:$4 sm:$0xff]  }
  0x2e   :  { %1323 = vmatprep.subr.bf16.mxu1 %v1481_v46  ;;  %v1513_v46 = vld [vmem:[%s2040_s3 + $0x274] ss:$12 sps:$4 sm:$0xff]  }
  0x30   :  { %804 = vmatpush1.bf16.msra.mxu0 %v1448_v37  ;;  %v1503_v37 = vld [vmem:[%s2040_s3 + $0x240] ss:$12 sps:$4 sm:$0xff]  }
  0x31   :  { %805 = vmatprep.subr.bf16.mxu0 %v1453_v38  ;;  %1324 = vmatpush3.bf16.msra.mxu1 %v1482_v47  ;;  %v1506_v38 = vld [vmem:[%s2040_s3 + $0x248] ss:$12 sps:$4 sm:$0xff]  }
  0x32   :  { %1325 = vmatprep.subr.bf16.mxu1 %v1486_v48 }
  0x34   :  { %806 = vmatpush1.bf16.msra.mxu0 %v1451_v41 }
  0x35   :  { %807 = vmatprep.subr.bf16.mxu0 %v1456_v42  ;;  %1326 = vmatpush3.bf16.msra.mxu1 %v1487_v51  ;;  %v1511_v51 = vld [vmem:[%s2040_s3 + $0x270] ss:$12 sps:$4 sm:$0xff]  }
  0x36   :  { %1327 = vmatprep.subr.bf16.mxu1 %v1491_v52  ;;  %v1514_v52 = vld [vmem:[%s2040_s3 + $0x278] ss:$12 sps:$4 sm:$0xff]  }
  0x38   :  { %808 = vmatpush1.bf16.msra.mxu0 %v1454_v43  ;;  %v1507_v43 = vld [vmem:[%s2040_s3 + $0x258] ss:$12 sps:$4 sm:$0xff]  }
  0x39   :  { %809 = vmatprep.subr.bf16.mxu0 %v1459_v45  ;;  %1328 = vmatpush3.bf16.msra.mxu1 %v1492_v55  ;;  %v1518_v55 = vld [vmem:[%s2040_s3 + $0x290] ss:$12 sps:$4 sm:$0xff]  }
  0x3a   :  { %1329 = vmatprep.subr.bf16.mxu1 %v1496_v6 }
  0x3c   :  { %810 = vmatpush1.bf16.msra.mxu0 %v1457_v49 }
  0x3d   :  { %811 = vmatprep.subr.bf16.mxu0 %v1462_v50  ;;  %1330 = vmatpush3.bf16.msra.mxu1 %v1497_v8 }
  0x3e   :  { %1331 = vmatprep.subr.bf16.mxu1 %v1501_v10 }
  0x40   :  { %812 = vmatpush1.bf16.msra.mxu0 %v1460_v53 }
  0x41   :  { %813 = vmatprep.subr.bf16.mxu0 %v1465_v54  ;;  %1332 = vmatpush3.bf16.msra.mxu1 %v1502_v12  ;;  %v1515_v54 = vld [vmem:[%s2040_s3 + $0x288] ss:$12 sps:$4 sm:$0xff]  }
  0x42   :  { %1368 = vmatprep.subr.bf16.mxu1 %v1587_v1  ;;  %v1204_v12 = vld [vmem:[%s2042_s4 + $0x1] ss:$8 sm:$0x7] }
  0x44   :  { %814 = vmatpush1.bf16.msra.mxu0 %v1463_v56  ;;  %v1521_v56 = vld [vmem:[%s2040_s3 + $0x2a4] ss:$12 sps:$4 sm:$0xff]  }
  0x45   :  { %815 = vmatprep.subr.bf16.mxu0 %v1470_v57  ;;  %v1519_v57 = vld [vmem:[%s2040_s3 + $0x2a0] ss:$12 sps:$4 sm:$0xff]  }
  0x48   :  { %816 = vmatpush1.bf16.msra.mxu0 %v1468_v58  ;;  %v1522_v58 = vld [vmem:[%s2040_s3 + $0x2a8] ss:$12 sps:$4 sm:$0xff]  }
  0x49   :  { %817 = vmatprep.subr.bf16.mxu0 %v1475_v59  ;;  %v1525_v59 = vld [vmem:[%s2040_s3 + $0x2bc] ss:$12 sps:$4 sm:$0xff]  }
  0x4c   :  { %818 = vmatpush1.bf16.msra.mxu0 %v1473_v60  ;;  %v1523_v60 = vld [vmem:[%s2040_s3 + $0x2b8] ss:$12 sps:$4 sm:$0xff]  }
  0x4d   :  { %819 = vmatprep.subr.bf16.mxu0 %v1480_v61  ;;  %v1526_v61 = vld [vmem:[%s2040_s3 + $0x2c0] ss:$12 sps:$4 sm:$0xff]  }
  0x50   :  { %820 = vmatpush1.bf16.msra.mxu0 %v1478_v62  ;;  %v1529_v62 = vld [vmem:[%s2040_s3 + $0x2d4] ss:$12 sps:$4 sm:$0xff]  }
  0x51   :  { %821 = vmatprep.subr.bf16.mxu0 %v1485_v63  ;;  %v1527_v63 = vld [vmem:[%s2040_s3 + $0x2d0] ss:$12 sps:$4 sm:$0xff]  }
  0x54   :  { %822 = vmatpush1.bf16.msra.mxu0 %v1483_v0  ;;  %v1530_v0 = vld [vmem:[%s2040_s3 + $0x2d8] ss:$12 sps:$4 sm:$0xff]  }
  0x55   :  { %823 = vmatprep.subr.bf16.mxu0 %v1490_v3  ;;  %v1533_v3 = vld [vmem:[%s2040_s3 + $0x2ec] ss:$12 sps:$4 sm:$0xff]  }
  0x58   :  { %824 = vmatpush1.bf16.msra.mxu0 %v1488_v4  ;;  %v1531_v4 = vld [vmem:[%s2040_s3 + $0x2e8] ss:$12 sps:$4 sm:$0xff]  }
  0x59   :  { %825 = vmatprep.subr.bf16.mxu0 %v1495_v5  ;;  %v1534_v5 = vld [vmem:[%s2040_s3 + $0x2f0] ss:$12 sps:$4 sm:$0xff]  }
  0x5c   :  { %826 = vmatpush1.bf16.msra.mxu0 %v1493_v7 }
  0x5d   :  { %827 = vmatprep.subr.bf16.mxu0 %v1500_v9 }
  0x60   :  { %828 = vmatpush1.bf16.msra.mxu0 %v1498_v11 }
  0x61   :  { %840 = vmatprep.subr.bf16.mxu0 %v1505_v13  ;;  %v409_v13 = vrot.slane %v1204_v12, %v165_v28 }
  0xf6   :  { %v338_v21 = vpop.f32.mrb[0].mxu0 }
  0xf7   :  { %v339_v22 = vadd.f32 %v338_v21, %v158_v19  ;;  %v340_v23 = vpop.f32.mrb[1].mxu0  ;;  %v381_v40 = vpop.f32.mrb[0].mxu1 }
  0xf8   :  { %v341_v24 = vadd.f32 %v340_v23, %v162_v20  ;;  %v342_v25 = vpop.f32.mrb[2].mxu0  ;;  %v382_v41 = vadd.f32 %v381_v40, %v166_v35  ;;  %v1366_v42 = vpop.f32.mrb[1].mxu1 }
  0xf9   :  { %v343_v26 = vadd.f32 %v342_v25, %v158_v19  ;;  %v344_v27 = vpop.f32.mrb[3].mxu0  ;;  %v388_v30 = vmax.f32 %v339_v22, 0.0  ;;  %v384_v45 = vpop.f32.mrb[2].mxu1 }
  0xfa   :  { %v345_v29 = vadd.f32 %v344_v27, %v162_v20  ;;  %v389_v32 = vmax.f32 %v341_v24, 0.0  ;;  %v390_v47 = vmax.f32 %v382_v41, 0.0  ;;  %v385_v48 = vadd.f32 %v384_v45, %v166_v35  ;;  %v1367_v49 = vpop.f32.mrb[3].mxu1 }
  0xfb   :  { %v391_v31 = vmax.f32 %v343_v26, 0.0  ;;  %v405_v20 = vrot.slane %v1204_v12, %v161_v18  ;;  %v1966_v26 = vld [vmem:[%s2043_s0] sm:$0xff] }
  0xfc   :  { %v392_v33 = vmax.f32 %v345_v29, 0.0  ;;  %v393_v50 = vmax.f32 %v385_v48, 0.0 }
  0xfd   :  { %v394_v34 = vpack.c.bf16 %v391_v31, %v388_v30  ;;  %v401_v30 = vrot.slane %v1204_v12, %v157_v16 }
  0xfe   :  { %v395_v36 = vpack.c.bf16 %v392_v33, %v389_v32  ;;  %v396_v53 = vpack.c.bf16 %v393_v50, %v390_v47 }
 0x100   :  { %829 = vmatprep.mubr.bf16.mxu0 %v395_v36  ;;  %915 = vmatprep.mubr.bf16.mxu1 %v395_v36 }
 0x101   :  { %830 = vmatmul.mubr.bf16.vlgmr.msra.gmra.mrb[4].mxu0 %v394_v34  ;;  %916 = vmatmul.mubr.bf16.vlgmr.msra.gmra.mrb[4].mxu1 %v394_v34  ;;  %v1981_v34 = vld [vmem:[%s2043_s0 + $0x8] sm:$0xff]  ;;  %s1590_s0 = smov 98  }
 0x102   :  { %841 = vmatpush1.bf16.msra.mxu0 %v1503_v37  ;;  %1369 = vmatpush3.bf16.msra.mxu1 %v1506_v38 }
 0x103   :  { %842 = vmatprep.subr.bf16.mxu0 %v1509_v39  ;;  %1370 = vmatprep.subr.bf16.mxu1 %v1587_v1 }
 0x104   :  { %872 = vmatprep.mubr.bf16.mxu0 %v1588_v2  ;;  %1384 = vmatprep.mubr.msk.bf16.mxu1 %vm1589_vm0, %v1587_v1  ;;  %v1517_v2 = vld [vmem:[%s2040_s3 + $0x28c] ss:$12 sps:$4 sm:$0xff]  }
 0x106   :  { %843 = vmatpush1.bf16.msra.mxu0 %v1507_v43  ;;  %1371 = vmatpush3.bf16.msra.mxu1 %v1510_v44 }
 0x107   :  { %844 = vmatprep.subr.bf16.mxu0 %v1513_v46  ;;  %1372 = vmatprep.subr.bf16.mxu1 %v1587_v1 }
 0x10a   :  { %845 = vmatpush1.bf16.msra.mxu0 %v1511_v51  ;;  %1373 = vmatpush3.bf16.msra.mxu1 %v1514_v52 }
 0x10b   :  { %846 = vmatprep.subr.bf16.mxu0 %v1517_v2  ;;  %1374 = vmatprep.subr.bf16.mxu1 %v1587_v1 }
 0x10e   :  { %847 = vmatpush1.bf16.msra.mxu0 %v1515_v54  ;;  %1375 = vmatpush3.bf16.msra.mxu1 %v1518_v55 }
 0x10f   :  { %848 = vmatprep.subr.bf16.mxu0 %v1521_v56  ;;  %1376 = vmatprep.subr.bf16.mxu1 %v1587_v1 }
 0x112   :  { %849 = vmatpush1.bf16.msra.mxu0 %v1519_v57  ;;  %1377 = vmatpush3.bf16.msra.mxu1 %v1522_v58 }
 0x113   :  { %850 = vmatprep.subr.bf16.mxu0 %v1525_v59  ;;  %1378 = vmatprep.subr.bf16.mxu1 %v1587_v1 }
 0x116   :  { %851 = vmatpush1.bf16.msra.mxu0 %v1523_v60  ;;  %1379 = vmatpush3.bf16.msra.mxu1 %v1526_v61 }
 0x117   :  { %852 = vmatprep.subr.bf16.mxu0 %v1529_v62  ;;  %1380 = vmatprep.subr.bf16.mxu1 %v1587_v1 }
 0x11a   :  { %853 = vmatpush1.bf16.msra.mxu0 %v1527_v63  ;;  %1381 = vmatpush3.bf16.msra.mxu1 %v1530_v0 }
 0x11b   :  { %854 = vmatprep.subr.bf16.mxu0 %v1533_v3  ;;  %1382 = vmatprep.subr.bf16.mxu1 %v1587_v1 }
 0x11e   :  { %855 = vmatpush1.bf16.msra.mxu0 %v1531_v4  ;;  %1383 = vmatpush3.bf16.msra.mxu1 %v1534_v5 }
 0x121   :  { %873 = vmatmul.mubr.bf16.vlgmr.msra.gmra.mrb[4].mxu0 %v396_v53  ;;  %1385 = vmatmul.mubr.bf16.vlgmr.msra.gmra.mrb[8].mxu1 %v396_v53 }
 0x1d4   :  { %v1333_v6 = vpop.f32.mrb[4].mxu1 }
 0x1d5   :  { %v1334_v7 = vpop.f32.mrb[5].mxu1 }
 0x1d6   :  { %v1335_v8 = vadd.f32 %v1334_v7, %v1333_v6  ;;  %v1336_v9 = vpop.f32.mrb[6].mxu1 }
 0x1d7   :  { %v1337_v10 = vpop.f32.mrb[7].mxu1 }
 0x1d8   :  { %v1338_v11 = vadd.f32 %v1337_v10, %v1336_v9  ;;  %v918_v14 = vadd.f32 %v1335_v8, %v409_v13 }
 0x1da   :  { %v921_v24 = vadd.f32 %v1338_v11, %v409_v13 }
 0x1f4   :  { %v874_v17 = vpop.f32.mrb[4].mxu0  ;;  %v958_v1 = vpop.f32.mrb[8].mxu1 }
 0x1f5   :  { %v1959_v19 = vadd.f32 %v958_v1, %v918_v14  ;;  %v876_v21 = vpop.f32.mrb[5].mxu0  ;;  %v1386_v22 = vpop.f32.mrb[9].mxu1  ;;  %v1985_v36 = vadd.f32 %v874_v17, %v401_v30 }
 0x1f6   :  { %v878_v23 = vpop.f32.mrb[6].mxu0  ;;  %v961_v25 = vpop.f32.mrb[10].mxu1  ;;  %v1972_v31 = vadd.f32 %v876_v21, %v405_v20 }
 0x1f7   :  { %v1968_v27 = vadd.f32 %v961_v25, %v921_v24  ;;  %v880_v28 = vpop.f32.mrb[7].mxu0  ;;  %v1387_v29 = vpop.f32.mrb[11].mxu1  ;;  %v1134_v18 = vsub.f32 %v1966_v26, %v1959_v19  ;;  %v1983_v35 = vadd.f32 %v878_v23, %v401_v30  ;;  %v995_v44 = vsub.f32 %v1966_v26, %v1985_v36 }
 0x1f8   :  { %v1976_v32 = vadd.f32 %v880_v28, %v405_v20  ;;  %v1062_v16 = vsub.f32 %v1966_v26, %v1972_v31  ;;  %v1116_v51 = vand.u32 2147483647, %v1959_v19  ;;  %v1044_v2 = vand.u32 2147483647, %v1972_v31 }
 0x1f9   :  { %v1136_v33 = vmul.f32 %v1134_v18, %v1134_v18  ;;  %v1135_v37 = vsub.f32 %v1981_v34, %v1968_v27  ;;  %v996_v41 = vsub.f32 %v1981_v34, %v1983_v35  ;;  %v997_v48 = vmul.f32 %v995_v44, %v995_v44 }
 0x1fa   :  { %v1064_v38 = vmul.f32 %v1062_v16, %v1062_v16  ;;  %v1063_v39 = vsub.f32 %v1981_v34, %v1976_v32  ;;  %v1118_v52 = vsub.f32 0.0, %v1116_v51  ;;  %v1045_v53 = vand.u32 2147483647, %v1976_v32 }
 0x1fb   :  { %v1138_v15 = vsel %vm999_vm1, %v1136_v33, 0.0  ;;  %v1137_v40 = vmul.f32 %v1135_v37, %v1135_v37  ;;  %v998_v46 = vmul.f32 %v996_v41, %v996_v41  ;;  %v1000_v50 = vsel %vm999_vm1, %v997_v48, 0.0 }
 0x1fc   :  { %1139 = vadd.xlane.f32.xlu1 %v1138_v15  ;;  %v1066_v42 = vsel %vm999_vm1, %v1064_v38, 0.0  ;;  %v1065_v43 = vmul.f32 %v1063_v39, %v1063_v39  ;;  %v1120_v54 = vmul.f32 1.442695, %v1118_v52  ;;  %v1046_v55 = vsub.f32 0.0, %v1044_v2 }
 0x1fd   :  { %1067 = vadd.xlane.f32.xlu0 %v1066_v42  ;;  %v1141_v45 = vsel %vm999_vm1, %v1137_v40, 0.0  ;;  %v1003_v49 = vsel %vm999_vm1, %v998_v46, 0.0  ;;  %v1117_v56 = vand.u32 2147483647, %v1968_v27  ;;  %v977_v57 = vand.u32 2147483647, %v1985_v36 }
 0x1fe   :  { %v1069_v47 = vsel %vm999_vm1, %v1065_v43, 0.0  ;;  %v1047_v58 = vsub.f32 0.0, %v1045_v53  ;;  %1535 = vpow2.f32 %v1120_v54  ;;  %v1048_v59 = vmul.f32 1.442695, %v1046_v55 }
 0x1ff   :  { %v978_v60 = vand.u32 2147483647, %v1983_v35  ;;  %v1119_v61 = vsub.f32 0.0, %v1117_v56  ;;  %v979_v62 = vsub.f32 0.0, %v977_v57  ;;  %v1114_v24 = vmax.f32 %v1959_v19, 0.0 }
 0x200   :  { %1142 = vadd.xlane.f32.xlu1 %v1141_v45  ;;  %v1050_v63 = vmul.f32 1.442695, %v1047_v58  ;;  %1537 = vpow2.f32 %v1048_v59  ;;  %v1042_v18 = vmax.f32 %v1972_v31, 0.0  ;;  %v1043_v39 = vmax.f32 %v1976_v32, 0.0 }
 0x201   :  { %1070 = vadd.xlane.f32.xlu0 %v1069_v47  ;;  %v980_v0 = vsub.f32 0.0, %v978_v60  ;;  %v1122_v3 = vmul.f32 1.442695, %v1119_v61  ;;  %v981_v4 = vmul.f32 1.442695, %v979_v62  ;;  %v1115_v42 = vmax.f32 %v1968_v27, 0.0 }
 0x202   :  { %1539 = vpow2.f32 %v1050_v63  ;;  %v975_v44 = vmax.f32 %v1985_v36, 0.0  ;;  %v976_v48 = vmax.f32 %v1983_v35, 0.0  ;;  %v971_v35 = vmul.f32 %v1966_v26, %v1966_v26 }
 0x203   :  { %v983_v5 = vmul.f32 1.442695, %v980_v0  ;;  %1541 = vpow2.f32 %v1122_v3 }
 0x204   :  { %1004 = vadd.xlane.f32.xlu1 %v1003_v49  ;;  %1543 = vpow2.f32 %v981_v4  ;;  %v1014_v0 = vmul.f32 32.0, %v971_v35  ;;  %v972_v4 = vmul.f32 %v1981_v34, %v1981_v34 }
 0x205   :  { %1001 = vadd.xlane.f32.xlu0 %v1000_v50  ;;  %1545 = vpow2.f32 %v983_v5 }
 0x208   :  { %v1536_v6 = vpop.eup %1535 }
 0x209   :  { %v1124_v7 = vadd.f32 1.0, %v1536_v6 }
 0x20a   :  { %v1538_v8 = vpop.eup %1537 }
 0x20b   :  { %1547 = vlog2.f32 %v1124_v7  ;;  %v1052_v10 = vadd.f32 1.0, %v1538_v8 }
 0x20c   :  { %v1540_v9 = vpop.eup %1539 }
 0x20d   :  { %v1542_v11 = vpop.eup %1541  ;;  %v1053_v12 = vadd.f32 1.0, %v1540_v9  ;;  %1549 = vlog2.f32 %v1052_v10 }
 0x20e   :  { %v1544_v13 = vpop.eup %1543  ;;  %v1125_v14 = vadd.f32 1.0, %v1542_v11 }
 0x20f   :  { %v1546_v17 = vpop.eup %1545  ;;  %v985_v1 = vadd.f32 1.0, %v1544_v13  ;;  %1551 = vlog2.f32 %v1053_v12  ;;  %v1015_v13 = vmul.f32 32.0, %v972_v4 }
 0x210   :  { %v986_v20 = vadd.f32 1.0, %v1546_v17  ;;  %1553 = vlog2.f32 %v1125_v14 }
 0x211   :  { %1555 = vlog2.f32 %v985_v1 }
 0x212   :  { %1557 = vlog2.f32 %v986_v20 }
 0x213   :  { %1559 = vlog2.f32 %v1966_v26 }
 0x215   :  { %v1548_v21 = vpop.eup %1547 }
 0x216   :  { %v1127_v22 = vmul.f32 0.6931472, %v1548_v21 }
 0x217   :  { %v1550_v23 = vpop.eup %1549 }
 0x218   :  { %v1130_v28 = vadd.f32 %v1127_v22, %v1114_v24  ;;  %v1055_v29 = vmul.f32 0.6931472, %v1550_v23 }
 0x219   :  { %v1552_v25 = vpop.eup %1551 }
 0x21a   :  { %v1554_v30 = vpop.eup %1553  ;;  %v1057_v33 = vmul.f32 0.6931472, %v1552_v25  ;;  %v1132_v16 = vadd.f32 0.0001, %v1130_v28  ;;  %v1058_v37 = vadd.f32 %v1055_v29, %v1042_v18 }
 0x21b   :  { %v1556_v15 = vpop.eup %1555  ;;  %v1129_v38 = vmul.f32 0.6931472, %v1554_v30 }
 0x21c   :  { %v1558_v40 = vpop.eup %1557  ;;  %v988_v41 = vmul.f32 0.6931472, %v1556_v15  ;;  %v1059_v43 = vadd.f32 %v1057_v33, %v1043_v39  ;;  %v1060_v19 = vadd.f32 0.0001, %v1058_v37  ;;  %1561 = vlog2.f32 %v1132_v16 }
 0x21d   :  { %v1154_v45 = vmul.f32 2.0, %v1132_v16  ;;  %v990_v31 = vmul.f32 0.6931472, %v1558_v40  ;;  %v1131_v46 = vadd.f32 %v1129_v38, %v1115_v42  ;;  %v1560_v2 = vpop.eup %1559 }
 0x21e   :  { %v991_v47 = vadd.f32 %v988_v41, %v975_v44  ;;  %v1061_v49 = vadd.f32 0.0001, %v1059_v43  ;;  %1563 = vlog2.f32 %v1060_v19  ;;  %v1082_v52 = vmul.f32 2.0, %v1060_v19 }
 0x21f   :  { %v1156_v32 = vmul.f32 %v1154_v45, %v1132_v16  ;;  %v992_v50 = vadd.f32 %v990_v31, %v976_v48  ;;  %v1133_v51 = vadd.f32 0.0001, %v1131_v46  ;;  %1565 = vlog2.f32 %v1981_v34 }
 0x220   :  { %v993_v27 = vadd.f32 0.0001, %v991_v47  ;;  %1567 = vlog2.f32 %v1061_v49  ;;  %v1084_v55 = vmul.f32 %v1082_v52, %v1060_v19  ;;  %v1083_v56 = vmul.f32 2.0, %v1061_v49 }
 0x221   :  { %1569 = vrcp.f32 %v1156_v32  ;;  %v994_v53 = vadd.f32 0.0001, %v992_v50  ;;  %v1155_v36 = vmul.f32 2.0, %v1133_v51  ;;  %v2019_v57 = vmul.f32 0.6931472, %v1560_v2 }
 0x222   :  { %1571 = vlog2.f32 %v1133_v51  ;;  %v1018_v58 = vmul.f32 2.0, %v993_v27  ;;  %v1085_v63 = vmul.f32 %v1083_v56, %v1061_v49 }
 0x223   :  { %1573 = vlog2.f32 %v993_v27  ;;  %v1157_v59 = vmul.f32 %v1155_v36, %v1133_v51  ;;  %v1019_v62 = vmul.f32 2.0, %v994_v53 }
 0x224   :  { %1575 = vlog2.f32 %v994_v53  ;;  %v1020_v6 = vmul.f32 %v1018_v58, %v993_v27 }
 0x225   :  { %1577 = vrcp.f32 %v1084_v55  ;;  %v1021_v8 = vmul.f32 %v1019_v62, %v994_v53 }
 0x226   :  { %v1562_v54 = vpop.eup %1561  ;;  %1579 = vrcp.f32 %v1157_v59 }
 0x227   :  { %v1145_v60 = vmul.f32 0.6931472, %v1562_v54  ;;  %1581 = vrcp.f32 %v1085_v63 }
 0x228   :  { %v1564_v61 = vpop.eup %1563  ;;  %1583 = vrcp.f32 %v1020_v6  ;;  %v974_v6 = vld [vmem:[%s2044_s2 + $0x8] sm:$0xff] }
 0x229   :  { %v1566_v3 = vpop.eup %1565  ;;  %v1148_v26 = vsub.f32 %v1145_v60, %v2019_v57  ;;  %v1073_v7 = vmul.f32 0.6931472, %v1564_v61  ;;  %1585 = vrcp.f32 %v1021_v8 }
 0x22a   :  { %v1568_v5 = vpop.eup %1567  ;;  %v970_v14 = vmul.f32 0.6931472, %v1566_v3 }
 0x22b   :  { %v1570_v10 = vpop.eup %1569  ;;  %v1075_v17 = vmul.f32 0.6931472, %v1568_v5  ;;  %v1150_v21 = vmul.f32 32.0, %v1148_v26  ;;  %v1076_v34 = vsub.f32 %v1073_v7, %v2019_v57 }
 0x22c   :  { %v1572_v12 = vpop.eup %1571 }
 0x22d   :  { %v1574_v1 = vpop.eup %1573  ;;  %v1147_v29 = vmul.f32 0.6931472, %v1572_v12  ;;  %v1077_v18 = vsub.f32 %v1075_v17, %v970_v14  ;;  %v1078_v38 = vmul.f32 32.0, %v1076_v34 }
 0x22e   :  { %v1576_v23 = vpop.eup %1575  ;;  %v1007_v33 = vmul.f32 0.6931472, %v1574_v1 }
 0x22f   :  { %v1578_v30 = vpop.eup %1577  ;;  %v1149_v19 = vsub.f32 %v1147_v29, %v970_v14  ;;  %v1009_v44 = vmul.f32 0.6931472, %v1576_v23  ;;  %v1079_v31 = vmul.f32 32.0, %v1077_v18 }
 0x230   :  { %v1580_v40 = vpop.eup %1579  ;;  %v1010_v46 = vsub.f32 %v1007_v33, %v2019_v57 }
 0x231   :  { %v1582_v45 = vpop.eup %1581  ;;  %v1151_v2 = vmul.f32 32.0, %v1149_v19  ;;  %v1011_v53 = vsub.f32 %v1009_v44, %v970_v14 }
 0x232   :  { %v1584_v51 = vpop.eup %1583  ;;  %v1012_v54 = vmul.f32 32.0, %v1010_v46 }
 0x233   :  { %v1586_v36 = vpop.eup %1585  ;;  %v1013_v59 = vmul.f32 32.0, %v1011_v53 }
 0x289   :  { %v1140_v9 = vpop.xlane.xlu1 %1139 }
 0x28a   :  { %v1152_v11 = vadd.f32 %v1140_v9, %v1014_v0  ;;  %v1068_v22 = vpop.xlane.xlu0 %1067 }
 0x28b   :  { %v1080_v24 = vadd.f32 %v1068_v22, %v1014_v0 }
 0x28c   :  { %v1159_v20 = vmul.f32 %v1570_v10, %v1152_v11 }
 0x28d   :  { %v1143_v25 = vpop.xlane.xlu1 %1142  ;;  %v1087_v15 = vmul.f32 %v1578_v30, %v1080_v24 }
 0x28e   :  { %v1162_v28 = vadd.f32 %v1159_v20, %v1150_v21  ;;  %v1153_v16 = vadd.f32 %v1143_v25, %v1015_v13  ;;  %v1071_v39 = vpop.xlane.xlu0 %1070 }
 0x28f   :  { %v1081_v41 = vadd.f32 %v1071_v39, %v1015_v13  ;;  %v1090_v43 = vadd.f32 %v1087_v15, %v1078_v38 }
 0x290   :  { %v1306_v37 = vadd.f32 -16.0, %v1162_v28  ;;  %v1161_v47 = vmul.f32 %v1580_v40, %v1153_v16 }
 0x291   :  { %v1005_v42 = vpop.xlane.xlu1 %1004  ;;  %v1089_v48 = vmul.f32 %v1582_v45, %v1081_v41  ;;  %v1304_v32 = vadd.f32 -16.0, %v1090_v43 }
 0x292   :  { %1168 = vrot.lane.b32.xlu1 %v1306_v37, %s1590_s0  ;;  %v1017_v49 = vadd.f32 %v1015_v13, %v1005_v42  ;;  %v1002_v50 = vpop.xlane.xlu0 %1001  ;;  %v1163_v58 = vadd.f32 %v1161_v47, %v1151_v2 }
 0x293   :  { %v1016_v52 = vadd.f32 %v1014_v0, %v1002_v50  ;;  %1096 = vrot.lane.b32.xlu0 %v1304_v32, %s1591_s12  ;;  %v1091_v27 = vadd.f32 %v1089_v48, %v1079_v31  ;;  %v973_v0 = vld [vmem:[%s2044_s2] sm:$0xff] }
 0x294   :  { %v1025_v55 = vmul.f32 %v1586_v36, %v1017_v49  ;;  %v1307_v60 = vadd.f32 -16.0, %v1163_v58 }
 0x295   :  { %v1023_v56 = vmul.f32 %v1584_v51, %v1016_v52  ;;  %v1305_v35 = vadd.f32 -16.0, %v1091_v27 }
 0x296   :  { %v1027_v62 = vadd.f32 %v1025_v55, %v1013_v59 }
 0x297   :  { %1098 = vrot.lane.b32.xlu1 %v1305_v35, %s1591_s12  ;;  %v1026_v57 = vadd.f32 %v1023_v56, %v1012_v54 }
 0x298   :  { %v1303_v63 = vadd.f32 -16.0, %v1027_v62 }
 0x299   :  { %v1302_v61 = vadd.f32 -16.0, %v1026_v57 }
 0x29b   :  { %1170 = vrot.lane.b32.xlu1 %v1307_v60, %s1590_s0  ;;  %1032 = vrot.lane.b32.xlu0 %v1302_v61, %s1592_s13 }
 0x29f   :  { %1034 = vrot.lane.b32.xlu1 %v1303_v63, %s1592_s13 }
 0x304   :  { %v1169_v3 = vpop.permute.xlu1 %1168 }
 0x305   :  { %v1097_v4 = vpop.permute.xlu0 %1096  ;;  %v1174_v7 = vmul.f32 %v1169_v3, %v973_v0 }
 0x306   :  { %v1102_v5 = vmul.f32 %v1097_v4, %v973_v0 }
 0x308   :  { %1106 = vrot.lane.b32.xlu0 %v1102_v5, %s1593_s18 }
 0x309   :  { %v1099_v26 = vpop.permute.xlu1 %1098 }
 0x30a   :  { %v1103_v8 = vmul.f32 %v1099_v26, %v974_v6 }
 0x30c   :  { %1108 = vrot.lane.b32.xlu1 %v1103_v8, %s1593_s18  ;;  %1178 = vrot.lane.b32.xlu0 %v1174_v7, %s1594_s19 }
 0x30d   :  { %v1171_v9 = vpop.permute.xlu1 %1170  ;;  %v1033_v11 = vpop.permute.xlu0 %1032 }
 0x30e   :  { %v1175_v10 = vmul.f32 %v1171_v9, %v974_v6  ;;  %v1038_v14 = vmul.f32 %v1033_v11, %v973_v0 }
 0x310   :  { %1180 = vrot.lane.b32.xlu1 %v1175_v10, %s1594_s19 }
 0x311   :  { %v1035_v12 = vpop.permute.xlu1 %1034 }
 0x312   :  { %v1039_v21 = vmul.f32 %v1035_v12, %v974_v6 }
 0x37a   :  { %v1107_v13 = vpop.permute.xlu0 %1106 }
 0x37b   :  { %v1112_v17 = vadd.f32 %v1107_v13, %v1038_v14 }
 0x37e   :  { %v1109_v1 = vpop.permute.xlu1 %1108  ;;  %v1179_v20 = vpop.permute.xlu0 %1178 }
 0x37f   :  { %v1184_v34 = vadd.f32 %v1179_v20, %v1112_v17  ;;  %v1113_v22 = vadd.f32 %v1109_v1, %v1039_v21 }
 0x381   :  { %v1186_v23 = vsub.f32 0.0, %v1184_v34 }
 0x382   :  { %v1181_v24 = vpop.permute.xlu1 %1180 }
 0x383   :  { %v1185_v25 = vadd.f32 %v1181_v24, %v1113_v22  ;;  %1190 = vperm.xlu0 %1404, %v1186_v23  }
 0x385   :  { %v1187_v28 = vsub.f32 0.0, %v1185_v25 }
 0x387   :  { %1195 = vperm.xlu1 %1405, %v1187_v28  }
 0x402   :  { %v1191_v29 = vpop.permute.xlu0 %1190 }
 0x403   :  { %1198 = vst [vmem:[%s2045_s5] sm:$0xff] %v1191_v29 }
 0x406   :  { %v1196_v30 = vpop.permute.xlu1 %1195 }
 0x407   :  { %1199 = vst [vmem:[%s2045_s5 + $0x8] sm:$0xff] %v1196_v30 }

</bundles_post_ra>
